<compile_context>
chip_gen: v5e
topology: v5e:2x2
jax: 0.10.0
libtpu: 0.0.40
codegen_flags: <defaults>
</compile_context>

<pallas_src>
import functools

import jax
import jax.numpy as jnp
from jax import lax
from jax.experimental import pallas as pl
from jax.experimental.pallas import tpu as pltpu

EPS = 1e-4


def _binlinear_bn_kernel(h_ref, w_ref, b_ref, g_ref, be_ref, o_ref, *, mode):
    """One out-feature tile of: BinaryLinear -> BatchNorm1d(train) [-> ReLU | LogSoftmax]."""
    h = h_ref[...]                                  # (B, K) f32, resident
    wb = w_ref[...].astype(jnp.float32)             # (TN, K) +/-1 (stored bf16)

    # y = h @ wb.T without materializing a transpose: contract dim 1 of both.
    y = lax.dot_general(h, wb, (((1,), (1,)), ((), ())),
                        preferred_element_type=jnp.float32)
    y = y + b_ref[...]

    # BatchNorm1d, training mode: batch mean / biased batch variance, per feature.
    mu = jnp.mean(y, axis=0, keepdims=True)
    var = jnp.mean(jnp.square(y - mu), axis=0, keepdims=True)
    y = (y - mu) * lax.rsqrt(var + EPS) * g_ref[...] + be_ref[...]

    if mode == "relu":
        y = jnp.maximum(y, 0.0)
    elif mode == "logsoftmax":
        # Needs the full feature row: the head runs with tile_n == out_features.
        m = jnp.max(y, axis=1, keepdims=True)
        z = y - m
        lse = jnp.log(jnp.sum(jnp.exp(z), axis=1, keepdims=True))
        y = z - lse

    o_ref[...] = y


def _pick_tile(n, preferred=(512, 256, 128)):
    for t in preferred:
        if n >= t and n % t == 0:
            return t
    return n


def _layer(h, wb, b, g, be, *, mode, tile_n=None):
    """One BinaryLinear+BN(+ReLU/LogSoftmax) layer, out-features tiled on the grid."""
    B, K = h.shape
    N = wb.shape[0]

    if mode == "logsoftmax":
        tile_n = N                      # log-softmax needs the whole feature row
    elif tile_n is None or tile_n > N or N % tile_n != 0:
        tile_n = _pick_tile(N)

    grid = (N // tile_n,)
    flops = 2 * B * N * K
    bytes_accessed = int(wb.size) * wb.dtype.itemsize + (h.size + B * N + 3 * N) * 4

    kernel = functools.partial(_binlinear_bn_kernel, mode=mode)
    return pl.pallas_call(
        kernel,
        out_shape=jax.ShapeDtypeStruct((B, N), jnp.float32),
        grid=grid,
        in_specs=[
            pl.BlockSpec((B, K), lambda i: (0, 0)),        # activations, resident
            pl.BlockSpec((tile_n, K), lambda i: (i, 0)),   # streamed bf16 weight tile
            pl.BlockSpec((1, tile_n), lambda i: (0, i)),   # bias
            pl.BlockSpec((1, tile_n), lambda i: (0, i)),   # BN gamma
            pl.BlockSpec((1, tile_n), lambda i: (0, i)),   # BN beta
        ],
        out_specs=pl.BlockSpec((B, tile_n), lambda i: (0, i)),
        compiler_params=pltpu.CompilerParams(
            dimension_semantics=("parallel",)),
        cost_estimate=pl.CostEstimate(
            flops=flops,
            transcendentals=(B * N if mode == "logsoftmax" else 0),
            bytes_accessed=bytes_accessed),
    )(h, wb, b, g, be)


def prepare_params(params):
    """Pre-binarize weights once (outside the kernel) and reshape vectors to 2-D.

    +/-1 is exact in bf16, so storing binarized weights in bf16 halves HBM
    traffic with zero numeric change.  NOTE: binarization uses sign(0) = +1
    (w >= 0), the standard BinaryConnect hard sign.
    """
    prepared = []
    for (w, b, g, be) in params:
        wb = jnp.where(w >= 0.0, 1.0, -1.0).astype(jnp.bfloat16)
        prepared.append((wb,
                         b.reshape(1, -1).astype(jnp.float32),
                         g.reshape(1, -1).astype(jnp.float32),
                         be.reshape(1, -1).astype(jnp.float32)))
    return prepared


def binaryconnect_forward(x, prepared_params, *, tile_n=256):
    """Forward pass given prepare_params() output (weights reused across calls)."""
    h = x.astype(jnp.float32)
    n_layers = len(prepared_params)
    for li, (wb, b, g, be) in enumerate(prepared_params):
        mode = "logsoftmax" if li == n_layers - 1 else "relu"
        h = _layer(h, wb, b, g, be, mode=mode, tile_n=tile_n)
    return h


def _reference_forward(x, params):
    """Pure-JAX f32 reference for correctness checking."""
    h = x.astype(jnp.float32)
    n_layers = len(params)
    for li, (w, b, g, be) in enumerate(params):
        wb = jnp.where(w >= 0.0, 1.0, -1.0).astype(jnp.float32)
        y = h @ wb.T + b[None, :]
        mu = jnp.mean(y, axis=0, keepdims=True)
        var = jnp.mean(jnp.square(y - mu), axis=0, keepdims=True)
        y = (y - mu) * lax.rsqrt(var + EPS) * g[None, :] + be[None, :]
        if li < n_layers - 1:
            y = jnp.maximum(y, 0.0)
        h = y
    return jax.nn.log_softmax(h, axis=1)


def make_params(key, in_features, out_features, num_units):
    sizes = [(num_units, in_features),
             (num_units, num_units),
             (num_units, num_units),
             (out_features, num_units)]
    params = []
    for (fout, fin) in sizes:
        key, kw, kb, kg, kbe = jax.random.split(key, 5)
        w = 0.1 * jax.random.normal(kw, (fout, fin), dtype=jnp.float32)
        b = 0.05 * jax.random.normal(kb, (fout,), dtype=jnp.float32)
        g = 1.0 + 0.1 * jax.random.normal(kg, (fout,), dtype=jnp.float32)
        be = 0.1 * jax.random.normal(kbe, (fout,), dtype=jnp.float32)
        params.append((w, b, g, be))
    return params


if __name__ == "__main__":
    batch = 8
    in_features = 32
    num_units = 512      # small stand-in for the default 2048; same tiled code path
    out_features = 16

    key = jax.random.PRNGKey(0)
    kx, kp = jax.random.split(key)
    x = jax.random.normal(kx, (batch, in_features), dtype=jnp.float32)
    params = make_params(kp, in_features, out_features, num_units)

    prepared = prepare_params(params)                       # binarize weights once
    fwd = jax.jit(functools.partial(binaryconnect_forward, tile_n=256))
    out = jax.block_until_ready(fwd(x, prepared))

    ref = _reference_forward(x, params)
    assert out.shape == (batch, out_features)
    # f32 accumulation in both kernel and reference; tolerance covers MXU
    # multi-pass accumulation-order differences only.
    assert jnp.allclose(out, ref, atol=1e-3, rtol=1e-3), "mismatch vs reference"

    print("KERNEL_OK")
</pallas_src>

<mosaic_0001>
module attributes {stable_mosaic.version = 11 : i64} {
  func.func @_binlinear_bn_kernel(%arg0: i32, %arg1: memref<8x512xf32, #tpu.memory_space<vmem>>, %arg2: memref<256x512xbf16, #tpu.memory_space<vmem>>, %arg3: memref<1x256xf32, #tpu.memory_space<vmem>>, %arg4: memref<1x256xf32, #tpu.memory_space<vmem>>, %arg5: memref<1x256xf32, #tpu.memory_space<vmem>>, %arg6: memref<8x256xf32, #tpu.memory_space<vmem>>) attributes {dimension_semantics = [#tpu.dimension_semantics<parallel>], iteration_bounds = array<i64: 2>, scalar_prefetch = 0 : i64, scratch_operands = 0 : i64, tpu.core_type = #tpu.core_type<tc>, window_params = [{pipeline_mode = #tpu.pipeline_mode<synchronous>, transform_indices = @transform_0, window_bounds = array<i64: 8, 512>}, {transform_indices = @transform_1, window_bounds = array<i64: 256, 512>}, {transform_indices = @transform_2, window_bounds = array<i64: 1, 256>}, {transform_indices = @transform_3, window_bounds = array<i64: 1, 256>}, {transform_indices = @transform_4, window_bounds = array<i64: 1, 256>}, {transform_indices = @transform_5, window_bounds = array<i64: 8, 256>}]} {
    %c0 = arith.constant 0 : index
    %c0_0 = arith.constant 0 : index
    %0 = vector.load %arg1[%c0, %c0_0] : memref<8x512xf32, #tpu.memory_space<vmem>>, vector<8x512xf32>
    %c0_1 = arith.constant 0 : index
    %c0_2 = arith.constant 0 : index
    %1 = vector.load %arg2[%c0_1, %c0_2] : memref<256x512xbf16, #tpu.memory_space<vmem>>, vector<256x512xbf16>
    %2 = arith.extf %1 : vector<256x512xbf16> to vector<256x512xf32>
    %cst = arith.constant dense<0.000000e+00> : vector<8x256xf32>
    %3 = tpu.matmul %0, %2, %cst {dimension_numbers = #tpu.dot_dimension_numbers<[1], [1], [0], [0], [0, 0, 1, 0], [], []>} : vector<8x512xf32>, vector<256x512xf32>, vector<8x256xf32> -> vector<8x256xf32>
    %c0_3 = arith.constant 0 : index
    %c0_4 = arith.constant 0 : index
    %4 = vector.load %arg3[%c0_3, %c0_4] : memref<1x256xf32, #tpu.memory_space<vmem>>, vector<1x256xf32>
    %5 = vector.broadcast %4 : vector<1x256xf32> to vector<8x256xf32>
    %6 = arith.addf %3, %5 : vector<8x256xf32>
    %cst_5 = arith.constant dense<0.000000e+00> : vector<256xf32>
    %7 = vector.multi_reduction <add>, %6, %cst_5 [0] : vector<8x256xf32> to vector<256xf32>
    %8 = vector.shape_cast %7 : vector<256xf32> to vector<1x256xf32>
    %cst_6 = arith.constant 8.000000e+00 : f32
    %9 = vector.broadcast %cst_6 : f32 to vector<1x256xf32>
    %10 = arith.divf %8, %9 : vector<1x256xf32>
    %11 = vector.broadcast %10 : vector<1x256xf32> to vector<8x256xf32>
    %12 = arith.subf %6, %11 : vector<8x256xf32>
    %13 = arith.mulf %12, %12 : vector<8x256xf32>
    %cst_7 = arith.constant dense<0.000000e+00> : vector<256xf32>
    %14 = vector.multi_reduction <add>, %13, %cst_7 [0] : vector<8x256xf32> to vector<256xf32>
    %15 = vector.shape_cast %14 : vector<256xf32> to vector<1x256xf32>
    %cst_8 = arith.constant 8.000000e+00 : f32
    %16 = vector.broadcast %cst_8 : f32 to vector<1x256xf32>
    %17 = arith.divf %15, %16 : vector<1x256xf32>
    %18 = vector.broadcast %10 : vector<1x256xf32> to vector<8x256xf32>
    %19 = arith.subf %6, %18 : vector<8x256xf32>
    %cst_9 = arith.constant 9.99999974E-5 : f32
    %20 = vector.broadcast %cst_9 : f32 to vector<1x256xf32>
    %21 = arith.addf %17, %20 : vector<1x256xf32>
    %22 = math.rsqrt %21 : vector<1x256xf32>
    %23 = vector.broadcast %22 : vector<1x256xf32> to vector<8x256xf32>
    %24 = arith.mulf %19, %23 : vector<8x256xf32>
    %c0_10 = arith.constant 0 : index
    %c0_11 = arith.constant 0 : index
    %25 = vector.load %arg4[%c0_10, %c0_11] : memref<1x256xf32, #tpu.memory_space<vmem>>, vector<1x256xf32>
    %26 = vector.broadcast %25 : vector<1x256xf32> to vector<8x256xf32>
    %27 = arith.mulf %24, %26 : vector<8x256xf32>
    %c0_12 = arith.constant 0 : index
    %c0_13 = arith.constant 0 : index
    %28 = vector.load %arg5[%c0_12, %c0_13] : memref<1x256xf32, #tpu.memory_space<vmem>>, vector<1x256xf32>
    %29 = vector.broadcast %28 : vector<1x256xf32> to vector<8x256xf32>
    %30 = arith.addf %27, %29 : vector<8x256xf32>
    %cst_14 = arith.constant 0.000000e+00 : f32
    %31 = vector.broadcast %cst_14 : f32 to vector<8x256xf32>
    %32 = arith.maximumf %30, %31 : vector<8x256xf32>
    %c0_15 = arith.constant 0 : index
    %c0_16 = arith.constant 0 : index
    %33 = vector.load %arg6[%c0_15, %c0_16] : memref<8x256xf32, #tpu.memory_space<vmem>>, vector<8x256xf32>
    tpu.vector_store %arg6[%c0_15, %c0_16], %32 {strides = array<i32>} : memref<8x256xf32, #tpu.memory_space<vmem>>, vector<8x256xf32>,
    return
  }
  func.func @transform_0(%arg0: i32) -> (i32, i32) {
    %c0_i32 = arith.constant 0 : i32
    %c0_i32_0 = arith.constant 0 : i32
    %c0_i32_1 = arith.constant 0 : i32
    return %c0_i32, %c0_i32_0 : i32, i32
  }
  func.func @transform_1(%arg0: i32) -> (i32, i32) {
    %c0_i32 = arith.constant 0 : i32
    %c0_i32_0 = arith.constant 0 : i32
    return %arg0, %c0_i32 : i32, i32
  }
  func.func @transform_2(%arg0: i32) -> (i32, i32) {
    %c0_i32 = arith.constant 0 : i32
    %c0_i32_0 = arith.constant 0 : i32
    return %c0_i32, %arg0 : i32, i32
  }
  func.func @transform_3(%arg0: i32) -> (i32, i32) {
    %c0_i32 = arith.constant 0 : i32
    %c0_i32_0 = arith.constant 0 : i32
    return %c0_i32, %arg0 : i32, i32
  }
  func.func @transform_4(%arg0: i32) -> (i32, i32) {
    %c0_i32 = arith.constant 0 : i32
    %c0_i32_0 = arith.constant 0 : i32
    return %c0_i32, %arg0 : i32, i32
  }
  func.func @transform_5(%arg0: i32) -> (i32, i32) {
    %c0_i32 = arith.constant 0 : i32
    %c0_i32_0 = arith.constant 0 : i32
    return %c0_i32, %arg0 : i32, i32
  }
}

module attributes {stable_mosaic.version = 11 : i64} {
  func.func @_binlinear_bn_kernel(%arg0: i32, %arg1: memref<8x512xf32, #tpu.memory_space<vmem>>, %arg2: memref<256x512xbf16, #tpu.memory_space<vmem>>, %arg3: memref<1x256xf32, #tpu.memory_space<vmem>>, %arg4: memref<1x256xf32, #tpu.memory_space<vmem>>, %arg5: memref<1x256xf32, #tpu.memory_space<vmem>>, %arg6: memref<8x256xf32, #tpu.memory_space<vmem>>) attributes {dimension_semantics = [#tpu.dimension_semantics<parallel>], iteration_bounds = array<i64: 2>, scalar_prefetch = 0 : i64, scratch_operands = 0 : i64, tpu.core_type = #tpu.core_type<tc>, window_params = [{pipeline_mode = #tpu.pipeline_mode<synchronous>, transform_indices = @transform_0, window_bounds = array<i64: 8, 512>}, {transform_indices = @transform_1, window_bounds = array<i64: 256, 512>}, {transform_indices = @transform_2, window_bounds = array<i64: 1, 256>}, {transform_indices = @transform_3, window_bounds = array<i64: 1, 256>}, {transform_indices = @transform_4, window_bounds = array<i64: 1, 256>}, {transform_indices = @transform_5, window_bounds = array<i64: 8, 256>}]} {
    %c0 = arith.constant 0 : index
    %c0_0 = arith.constant 0 : index
    %0 = vector.load %arg1[%c0, %c0_0] : memref<8x512xf32, #tpu.memory_space<vmem>>, vector<8x512xf32>
    %c0_1 = arith.constant 0 : index
    %c0_2 = arith.constant 0 : index
    %1 = vector.load %arg2[%c0_1, %c0_2] : memref<256x512xbf16, #tpu.memory_space<vmem>>, vector<256x512xbf16>
    %2 = arith.extf %1 : vector<256x512xbf16> to vector<256x512xf32>
    %cst = arith.constant dense<0.000000e+00> : vector<8x256xf32>
    %3 = tpu.matmul %0, %2, %cst {dimension_numbers = #tpu.dot_dimension_numbers<[1], [1], [0], [0], [0, 0, 1, 0], [], []>} : vector<8x512xf32>, vector<256x512xf32>, vector<8x256xf32> -> vector<8x256xf32>
    %c0_3 = arith.constant 0 : index
    %c0_4 = arith.constant 0 : index
    %4 = vector.load %arg3[%c0_3, %c0_4] : memref<1x256xf32, #tpu.memory_space<vmem>>, vector<1x256xf32>
    %5 = vector.broadcast %4 : vector<1x256xf32> to vector<8x256xf32>
    %6 = arith.addf %3, %5 : vector<8x256xf32>
    %cst_5 = arith.constant dense<0.000000e+00> : vector<256xf32>
    %7 = vector.multi_reduction <add>, %6, %cst_5 [0] : vector<8x256xf32> to vector<256xf32>
    %8 = vector.shape_cast %7 : vector<256xf32> to vector<1x256xf32>
    %cst_6 = arith.constant 8.000000e+00 : f32
    %9 = vector.broadcast %cst_6 : f32 to vector<1x256xf32>
    %10 = arith.divf %8, %9 : vector<1x256xf32>
    %11 = vector.broadcast %10 : vector<1x256xf32> to vector<8x256xf32>
    %12 = arith.subf %6, %11 : vector<8x256xf32>
    %13 = arith.mulf %12, %12 : vector<8x256xf32>
    %cst_7 = arith.constant dense<0.000000e+00> : vector<256xf32>
    %14 = vector.multi_reduction <add>, %13, %cst_7 [0] : vector<8x256xf32> to vector<256xf32>
    %15 = vector.shape_cast %14 : vector<256xf32> to vector<1x256xf32>
    %cst_8 = arith.constant 8.000000e+00 : f32
    %16 = vector.broadcast %cst_8 : f32 to vector<1x256xf32>
    %17 = arith.divf %15, %16 : vector<1x256xf32>
    %18 = vector.broadcast %10 : vector<1x256xf32> to vector<8x256xf32>
    %19 = arith.subf %6, %18 : vector<8x256xf32>
    %cst_9 = arith.constant 9.99999974E-5 : f32
    %20 = vector.broadcast %cst_9 : f32 to vector<1x256xf32>
    %21 = arith.addf %17, %20 : vector<1x256xf32>
    %22 = math.rsqrt %21 : vector<1x256xf32>
    %23 = vector.broadcast %22 : vector<1x256xf32> to vector<8x256xf32>
    %24 = arith.mulf %19, %23 : vector<8x256xf32>
    %c0_10 = arith.constant 0 : index
    %c0_11 = arith.constant 0 : index
    %25 = vector.load %arg4[%c0_10, %c0_11] : memref<1x256xf32, #tpu.memory_space<vmem>>, vector<1x256xf32>
    %26 = vector.broadcast %25 : vector<1x256xf32> to vector<8x256xf32>
    %27 = arith.mulf %24, %26 : vector<8x256xf32>
    %c0_12 = arith.constant 0 : index
    %c0_13 = arith.constant 0 : index
    %28 = vector.load %arg5[%c0_12, %c0_13] : memref<1x256xf32, #tpu.memory_space<vmem>>, vector<1x256xf32>
    %29 = vector.broadcast %28 : vector<1x256xf32> to vector<8x256xf32>
    %30 = arith.addf %27, %29 : vector<8x256xf32>
    %cst_14 = arith.constant 0.000000e+00 : f32
    %31 = vector.broadcast %cst_14 : f32 to vector<8x256xf32>
    %32 = arith.maximumf %30, %31 : vector<8x256xf32>
    %c0_15 = arith.constant 0 : index
    %c0_16 = arith.constant 0 : index
    %33 = vector.load %arg6[%c0_15, %c0_16] : memref<8x256xf32, #tpu.memory_space<vmem>>, vector<8x256xf32>
    tpu.vector_store %arg6[%c0_15, %c0_16], %32 {strides = array<i32>} : memref<8x256xf32, #tpu.memory_space<vmem>>, vector<8x256xf32>,
    return
  }
  func.func @transform_0(%arg0: i32) -> (i32, i32) {
    %c0_i32 = arith.constant 0 : i32
    %c0_i32_0 = arith.constant 0 : i32
    %c0_i32_1 = arith.constant 0 : i32
    return %c0_i32, %c0_i32_0 : i32, i32
  }
  func.func @transform_1(%arg0: i32) -> (i32, i32) {
    %c0_i32 = arith.constant 0 : i32
    %c0_i32_0 = arith.constant 0 : i32
    return %arg0, %c0_i32 : i32, i32
  }
  func.func @transform_2(%arg0: i32) -> (i32, i32) {
    %c0_i32 = arith.constant 0 : i32
    %c0_i32_0 = arith.constant 0 : i32
    return %c0_i32, %arg0 : i32, i32
  }
  func.func @transform_3(%arg0: i32) -> (i32, i32) {
    %c0_i32 = arith.constant 0 : i32
    %c0_i32_0 = arith.constant 0 : i32
    return %c0_i32, %arg0 : i32, i32
  }
  func.func @transform_4(%arg0: i32) -> (i32, i32) {
    %c0_i32 = arith.constant 0 : i32
    %c0_i32_0 = arith.constant 0 : i32
    return %c0_i32, %arg0 : i32, i32
  }
  func.func @transform_5(%arg0: i32) -> (i32, i32) {
    %c0_i32 = arith.constant 0 : i32
    %c0_i32_0 = arith.constant 0 : i32
    return %c0_i32, %arg0 : i32, i32
  }
}

module attributes {stable_mosaic.version = 11 : i64} {
  func.func @_binlinear_bn_kernel(%arg0: i32, %arg1: memref<8x32xf32, #tpu.memory_space<vmem>>, %arg2: memref<256x32xbf16, #tpu.memory_space<vmem>>, %arg3: memref<1x256xf32, #tpu.memory_space<vmem>>, %arg4: memref<1x256xf32, #tpu.memory_space<vmem>>, %arg5: memref<1x256xf32, #tpu.memory_space<vmem>>, %arg6: memref<8x256xf32, #tpu.memory_space<vmem>>) attributes {dimension_semantics = [#tpu.dimension_semantics<parallel>], iteration_bounds = array<i64: 2>, scalar_prefetch = 0 : i64, scratch_operands = 0 : i64, tpu.core_type = #tpu.core_type<tc>, window_params = [{pipeline_mode = #tpu.pipeline_mode<synchronous>, transform_indices = @transform_0, window_bounds = array<i64: 8, 32>}, {transform_indices = @transform_1, window_bounds = array<i64: 256, 32>}, {transform_indices = @transform_2, window_bounds = array<i64: 1, 256>}, {transform_indices = @transform_3, window_bounds = array<i64: 1, 256>}, {transform_indices = @transform_4, window_bounds = array<i64: 1, 256>}, {transform_indices = @transform_5, window_bounds = array<i64: 8, 256>}]} {
    %c0 = arith.constant 0 : index
    %c0_0 = arith.constant 0 : index
    %0 = vector.load %arg1[%c0, %c0_0] : memref<8x32xf32, #tpu.memory_space<vmem>>, vector<8x32xf32>
    %c0_1 = arith.constant 0 : index
    %c0_2 = arith.constant 0 : index
    %1 = vector.load %arg2[%c0_1, %c0_2] : memref<256x32xbf16, #tpu.memory_space<vmem>>, vector<256x32xbf16>
    %2 = arith.extf %1 : vector<256x32xbf16> to vector<256x32xf32>
    %cst = arith.constant dense<0.000000e+00> : vector<8x256xf32>
    %3 = tpu.matmul %0, %2, %cst {dimension_numbers = #tpu.dot_dimension_numbers<[1], [1], [0], [0], [0, 0, 1, 0], [], []>} : vector<8x32xf32>, vector<256x32xf32>, vector<8x256xf32> -> vector<8x256xf32>
    %c0_3 = arith.constant 0 : index
    %c0_4 = arith.constant 0 : index
    %4 = vector.load %arg3[%c0_3, %c0_4] : memref<1x256xf32, #tpu.memory_space<vmem>>, vector<1x256xf32>
    %5 = vector.broadcast %4 : vector<1x256xf32> to vector<8x256xf32>
    %6 = arith.addf %3, %5 : vector<8x256xf32>
    %cst_5 = arith.constant dense<0.000000e+00> : vector<256xf32>
    %7 = vector.multi_reduction <add>, %6, %cst_5 [0] : vector<8x256xf32> to vector<256xf32>
    %8 = vector.shape_cast %7 : vector<256xf32> to vector<1x256xf32>
    %cst_6 = arith.constant 8.000000e+00 : f32
    %9 = vector.broadcast %cst_6 : f32 to vector<1x256xf32>
    %10 = arith.divf %8, %9 : vector<1x256xf32>
    %11 = vector.broadcast %10 : vector<1x256xf32> to vector<8x256xf32>
    %12 = arith.subf %6, %11 : vector<8x256xf32>
    %13 = arith.mulf %12, %12 : vector<8x256xf32>
    %cst_7 = arith.constant dense<0.000000e+00> : vector<256xf32>
    %14 = vector.multi_reduction <add>, %13, %cst_7 [0] : vector<8x256xf32> to vector<256xf32>
    %15 = vector.shape_cast %14 : vector<256xf32> to vector<1x256xf32>
    %cst_8 = arith.constant 8.000000e+00 : f32
    %16 = vector.broadcast %cst_8 : f32 to vector<1x256xf32>
    %17 = arith.divf %15, %16 : vector<1x256xf32>
    %18 = vector.broadcast %10 : vector<1x256xf32> to vector<8x256xf32>
    %19 = arith.subf %6, %18 : vector<8x256xf32>
    %cst_9 = arith.constant 9.99999974E-5 : f32
    %20 = vector.broadcast %cst_9 : f32 to vector<1x256xf32>
    %21 = arith.addf %17, %20 : vector<1x256xf32>
    %22 = math.rsqrt %21 : vector<1x256xf32>
    %23 = vector.broadcast %22 : vector<1x256xf32> to vector<8x256xf32>
    %24 = arith.mulf %19, %23 : vector<8x256xf32>
    %c0_10 = arith.constant 0 : index
    %c0_11 = arith.constant 0 : index
    %25 = vector.load %arg4[%c0_10, %c0_11] : memref<1x256xf32, #tpu.memory_space<vmem>>, vector<1x256xf32>
    %26 = vector.broadcast %25 : vector<1x256xf32> to vector<8x256xf32>
    %27 = arith.mulf %24, %26 : vector<8x256xf32>
    %c0_12 = arith.constant 0 : index
    %c0_13 = arith.constant 0 : index
    %28 = vector.load %arg5[%c0_12, %c0_13] : memref<1x256xf32, #tpu.memory_space<vmem>>, vector<1x256xf32>
    %29 = vector.broadcast %28 : vector<1x256xf32> to vector<8x256xf32>
    %30 = arith.addf %27, %29 : vector<8x256xf32>
    %cst_14 = arith.constant 0.000000e+00 : f32
    %31 = vector.broadcast %cst_14 : f32 to vector<8x256xf32>
    %32 = arith.maximumf %30, %31 : vector<8x256xf32>
    %c0_15 = arith.constant 0 : index
    %c0_16 = arith.constant 0 : index
    %33 = vector.load %arg6[%c0_15, %c0_16] : memref<8x256xf32, #tpu.memory_space<vmem>>, vector<8x256xf32>
    tpu.vector_store %arg6[%c0_15, %c0_16], %32 {strides = array<i32>} : memref<8x256xf32, #tpu.memory_space<vmem>>, vector<8x256xf32>,
    return
  }
  func.func @transform_0(%arg0: i32) -> (i32, i32) {
    %c0_i32 = arith.constant 0 : i32
    %c0_i32_0 = arith.constant 0 : i32
    %c0_i32_1 = arith.constant 0 : i32
    return %c0_i32, %c0_i32_0 : i32, i32
  }
  func.func @transform_1(%arg0: i32) -> (i32, i32) {
    %c0_i32 = arith.constant 0 : i32
    %c0_i32_0 = arith.constant 0 : i32
    return %arg0, %c0_i32 : i32, i32
  }
  func.func @transform_2(%arg0: i32) -> (i32, i32) {
    %c0_i32 = arith.constant 0 : i32
    %c0_i32_0 = arith.constant 0 : i32
    return %c0_i32, %arg0 : i32, i32
  }
  func.func @transform_3(%arg0: i32) -> (i32, i32) {
    %c0_i32 = arith.constant 0 : i32
    %c0_i32_0 = arith.constant 0 : i32
    return %c0_i32, %arg0 : i32, i32
  }
  func.func @transform_4(%arg0: i32) -> (i32, i32) {
    %c0_i32 = arith.constant 0 : i32
    %c0_i32_0 = arith.constant 0 : i32
    return %c0_i32, %arg0 : i32, i32
  }
  func.func @transform_5(%arg0: i32) -> (i32, i32) {
    %c0_i32 = arith.constant 0 : i32
    %c0_i32_0 = arith.constant 0 : i32
    return %c0_i32, %arg0 : i32, i32
  }
}

module attributes {stable_mosaic.version = 11 : i64} {
  func.func @_binlinear_bn_kernel(%arg0: i32, %arg1: memref<8x512xf32, #tpu.memory_space<vmem>>, %arg2: memref<16x512xbf16, #tpu.memory_space<vmem>>, %arg3: memref<1x16xf32, #tpu.memory_space<vmem>>, %arg4: memref<1x16xf32, #tpu.memory_space<vmem>>, %arg5: memref<1x16xf32, #tpu.memory_space<vmem>>, %arg6: memref<8x16xf32, #tpu.memory_space<vmem>>) attributes {dimension_semantics = [#tpu.dimension_semantics<parallel>], iteration_bounds = array<i64: 1>, scalar_prefetch = 0 : i64, scratch_operands = 0 : i64, tpu.core_type = #tpu.core_type<tc>, window_params = [{pipeline_mode = #tpu.pipeline_mode<synchronous>, transform_indices = @transform_0, window_bounds = array<i64: 8, 512>}, {transform_indices = @transform_1, window_bounds = array<i64: 16, 512>}, {transform_indices = @transform_2, window_bounds = array<i64: 1, 16>}, {transform_indices = @transform_3, window_bounds = array<i64: 1, 16>}, {transform_indices = @transform_4, window_bounds = array<i64: 1, 16>}, {transform_indices = @transform_5, window_bounds = array<i64: 8, 16>}]} {
    %c0 = arith.constant 0 : index
    %c0_0 = arith.constant 0 : index
    %0 = vector.load %arg1[%c0, %c0_0] : memref<8x512xf32, #tpu.memory_space<vmem>>, vector<8x512xf32>
    %c0_1 = arith.constant 0 : index
    %c0_2 = arith.constant 0 : index
    %1 = vector.load %arg2[%c0_1, %c0_2] : memref<16x512xbf16, #tpu.memory_space<vmem>>, vector<16x512xbf16>
    %2 = arith.extf %1 : vector<16x512xbf16> to vector<16x512xf32>
    %cst = arith.constant dense<0.000000e+00> : vector<8x16xf32>
    %3 = tpu.matmul %0, %2, %cst {dimension_numbers = #tpu.dot_dimension_numbers<[1], [1], [0], [0], [0, 0, 1, 0], [], []>} : vector<8x512xf32>, vector<16x512xf32>, vector<8x16xf32> -> vector<8x16xf32>
    %c0_3 = arith.constant 0 : index
    %c0_4 = arith.constant 0 : index
    %4 = vector.load %arg3[%c0_3, %c0_4] : memref<1x16xf32, #tpu.memory_space<vmem>>, vector<1x16xf32>
    %5 = vector.broadcast %4 : vector<1x16xf32> to vector<8x16xf32>
    %6 = arith.addf %3, %5 : vector<8x16xf32>
    %cst_5 = arith.constant dense<0.000000e+00> : vector<16xf32>
    %7 = vector.multi_reduction <add>, %6, %cst_5 [0] : vector<8x16xf32> to vector<16xf32>
    %8 = vector.shape_cast %7 : vector<16xf32> to vector<1x16xf32>
    %cst_6 = arith.constant 8.000000e+00 : f32
    %9 = vector.broadcast %cst_6 : f32 to vector<1x16xf32>
    %10 = arith.divf %8, %9 : vector<1x16xf32>
    %11 = vector.broadcast %10 : vector<1x16xf32> to vector<8x16xf32>
    %12 = arith.subf %6, %11 : vector<8x16xf32>
    %13 = arith.mulf %12, %12 : vector<8x16xf32>
    %cst_7 = arith.constant dense<0.000000e+00> : vector<16xf32>
    %14 = vector.multi_reduction <add>, %13, %cst_7 [0] : vector<8x16xf32> to vector<16xf32>
    %15 = vector.shape_cast %14 : vector<16xf32> to vector<1x16xf32>
    %cst_8 = arith.constant 8.000000e+00 : f32
    %16 = vector.broadcast %cst_8 : f32 to vector<1x16xf32>
    %17 = arith.divf %15, %16 : vector<1x16xf32>
    %18 = vector.broadcast %10 : vector<1x16xf32> to vector<8x16xf32>
    %19 = arith.subf %6, %18 : vector<8x16xf32>
    %cst_9 = arith.constant 9.99999974E-5 : f32
    %20 = vector.broadcast %cst_9 : f32 to vector<1x16xf32>
    %21 = arith.addf %17, %20 : vector<1x16xf32>
    %22 = math.rsqrt %21 : vector<1x16xf32>
    %23 = vector.broadcast %22 : vector<1x16xf32> to vector<8x16xf32>
    %24 = arith.mulf %19, %23 : vector<8x16xf32>
    %c0_10 = arith.constant 0 : index
    %c0_11 = arith.constant 0 : index
    %25 = vector.load %arg4[%c0_10, %c0_11] : memref<1x16xf32, #tpu.memory_space<vmem>>, vector<1x16xf32>
    %26 = vector.broadcast %25 : vector<1x16xf32> to vector<8x16xf32>
    %27 = arith.mulf %24, %26 : vector<8x16xf32>
    %c0_12 = arith.constant 0 : index
    %c0_13 = arith.constant 0 : index
    %28 = vector.load %arg5[%c0_12, %c0_13] : memref<1x16xf32, #tpu.memory_space<vmem>>, vector<1x16xf32>
    %29 = vector.broadcast %28 : vector<1x16xf32> to vector<8x16xf32>
    %30 = arith.addf %27, %29 : vector<8x16xf32>
    %cst_14 = arith.constant dense<0xFF800000> : vector<8xf32>
    %31 = vector.multi_reduction <maximumf>, %30, %cst_14 [1] : vector<8x16xf32> to vector<8xf32>
    %32 = vector.shape_cast %31 : vector<8xf32> to vector<8x1xf32>
    %33 = vector.broadcast %32 : vector<8x1xf32> to vector<8x16xf32>
    %34 = arith.subf %30, %33 : vector<8x16xf32>
    %35 = math.exp %34 : vector<8x16xf32>
    %cst_15 = arith.constant dense<0.000000e+00> : vector<8xf32>
    %36 = vector.multi_reduction <add>, %35, %cst_15 [1] : vector<8x16xf32> to vector<8xf32>
    %37 = vector.shape_cast %36 : vector<8xf32> to vector<8x1xf32>
    %38 = math.log %37 : vector<8x1xf32>
    %39 = vector.broadcast %38 : vector<8x1xf32> to vector<8x16xf32>
    %40 = arith.subf %34, %39 : vector<8x16xf32>
    %c0_16 = arith.constant 0 : index
    %c0_17 = arith.constant 0 : index
    %41 = vector.load %arg6[%c0_16, %c0_17] : memref<8x16xf32, #tpu.memory_space<vmem>>, vector<8x16xf32>
    tpu.vector_store %arg6[%c0_16, %c0_17], %40 {strides = array<i32>} : memref<8x16xf32, #tpu.memory_space<vmem>>, vector<8x16xf32>,
    return
  }
  func.func @transform_0(%arg0: i32) -> (i32, i32) {
    %c0_i32 = arith.constant 0 : i32
    %c0_i32_0 = arith.constant 0 : i32
    %c0_i32_1 = arith.constant 0 : i32
    return %c0_i32, %c0_i32_0 : i32, i32
  }
  func.func @transform_1(%arg0: i32) -> (i32, i32) {
    %c0_i32 = arith.constant 0 : i32
    %c0_i32_0 = arith.constant 0 : i32
    return %arg0, %c0_i32 : i32, i32
  }
  func.func @transform_2(%arg0: i32) -> (i32, i32) {
    %c0_i32 = arith.constant 0 : i32
    %c0_i32_0 = arith.constant 0 : i32
    return %c0_i32, %arg0 : i32, i32
  }
  func.func @transform_3(%arg0: i32) -> (i32, i32) {
    %c0_i32 = arith.constant 0 : i32
    %c0_i32_0 = arith.constant 0 : i32
    return %c0_i32, %arg0 : i32, i32
  }
  func.func @transform_4(%arg0: i32) -> (i32, i32) {
    %c0_i32 = arith.constant 0 : i32
    %c0_i32_0 = arith.constant 0 : i32
    return %c0_i32, %arg0 : i32, i32
  }
  func.func @transform_5(%arg0: i32) -> (i32, i32) {
    %c0_i32 = arith.constant 0 : i32
    %c0_i32_0 = arith.constant 0 : i32
    return %c0_i32, %arg0 : i32, i32
  }
}

</mosaic_0001>

<bundles_post_ra>
// kernel: binaryconnect_forward.5
= control target key start
LH: loop header
LB: loop body
LE: loop exit
PB: predicated region body
PF: predicated region fallthrough
CT: control target
= control target key end

     0   :  { %s1508_s0 = inlined_call_operand.vmem [shape: f32[8,512], index: 0, kind: input, shape index: {}]   ;;  %s1509_s1 = inlined_call_operand.hbm [shape: bf16[512,512], index: 1, kind: input, shape index: {}]   ;;  %s1510_s2 = inlined_call_operand.hbm [shape: f32[1,512], index: 2, kind: input, shape index: {}]   ;;  %s1511_s3 = inlined_call_operand.hbm [shape: f32[1,512], index: 3, kind: input, shape index: {}]   ;;  %s1512_s4 = inlined_call_operand.hbm [shape: f32[1,512], index: 4, kind: input, shape index: {}]   ;;  %s1513_s5 = inlined_call_operand.vmem [shape: f32[8,512], index: 5, kind: output, shape index: {}]  }
   0x1   :  { %1514 = sst [smem:[#allocation13_spill]] %s1510_s2 }
   0x2   :  { %10 = vsyncpa [#allocation3], 0 }
   0x3   :  { %12 = vsyncpa [#allocation3 + $0x1], 0 }
   0x4   :  { %13 = vsyncpa [#allocation5], 0 }
   0x5   :  { %15 = vsyncpa [#allocation5 + $0x1], 0 }
   0x6   :  { %16 = vsyncpa [#allocation8], 0 }
   0x7   :  { %18 = vsyncpa [#allocation8 + $0x1], 0  ;;  %s1230_s18 = smov 0   ;;  %s1232_s19 = smov 0  }
   0x8   :  { %s1234_s20 = smov 0   ;;  %s1236_s21 = smov 0  }
   0x9 LB: > { %s1249_s22 = sadd.s32 4294967295, %s1195_s21   ;;  %s1252_s23 = sadd.s32 1, %s1195_s21   ;;  %s1195_s21 = sphi %s1236_s21, %s1524_s21   ;;  %s1191_s20 = sphi %s1234_s20, %s1523_s20   ;;  %s1187_s19 = sphi %s1232_s19, %s1522_s19   ;;  %s1183_s18 = sphi %s1230_s18, %s1521_s18  }
   0xa   : > { %s49_s24 = ssub.s32 %s1195_s21, %s1252_s23  ;;  %s52_s25 = sadd.s32 1, %s1191_s20 }
   0xb   : > { %p50_p0 = scmp.eq.s32.totalorder %s49_s24, 0  ;;  %p59_p1 = scmp.ne.s32.totalorder %s1191_s20, %s1187_s19 }
   0xc   : > { %p60_p2 = scmp.eq.s32.totalorder %s1195_s21, 0  ;;  %p65_p3 = scmp.ne.s32.totalorder %s1187_s19, %s1183_s18 }
   0xd   : > { %s1262_s26 = scalar_select %p50_p0, %s1191_s20, %s52_s25  }
   0xe   : > { %p61_p4 = por %p60_p2, %p59_p1  ;;  %p66_p5 = scmp.eq.s32.totalorder %s1249_s22, 0 }
   0xf   : > { %1515 = sst [smem:[#allocation12_spill]] %s1262_s26  ;;  %p991_p6 = scmp.lt.s32.totalorder %s1195_s21, 2 }
  0x10   : > { %p1266_p7 = por %p66_p5, %p65_p3  ;;  %s1271_s28 = sand.u32 1, %s1191_s20  }
  0x11   : > { %p1273_p8 = pnand %p991_p6, %p61_p4  ;;  %s219_s30 = sand.u32 1, %s1195_s21  }
  0x12   : > { %s1279_s6 = sshll.u32 %s1271_s28, 1  ;;  %s1282_s7 = sshll.u32 %s1195_s21, 1 }
  0x13   : > { %s223_s8 = scalar_lea.vmem [#allocation4], %s1279_s6  ;;  %s1518_s2 = sld [smem:[#allocation13_spill]] }
  0x14   : > { %s231_s9 = sshll.u32 %s223_s8, 4  ;;  %p959_p9 = scmp.ge.s32.totalorder %s1195_s21, 1  ;;  %s232_s9 = int_to_ptr.vmem [resolvable:$true] %s231_s9 }
  0x15   : > { %p274_p10 = scmp.lt.s32.totalorder %s1195_s21, 3  ;;  %s1291_s14 = scalar_lea.sflag [#allocation5], %s219_s30 }
  0x16   : > { %p1037_p12 = pneg %p1273_p8 }
  0x19   : > { %s227_s12 = scalar_lea.hbm %s1518_s2, %s1282_s7  ;;  %s1040_s24 = scalar_lea.hbm %s1518_s2, 4 }
  0x1a   : > { %s229_s13 = sshll.u32 %s227_s12, 4  ;;  %s230_s13 = int_to_ptr.hbm [resolvable:$true] %s229_s13 }
  0x1b   : > { %s1033_s15 = sshra.s32 %s230_s13, 4  ;;  %s1034_s15 = int_to_ptr.hbm [resolvable:$true] %s1033_s15 }
  0x1c   : > { %s1035_s16 = scalar_lea.hbm %s1034_s15, 2  ;;  %p1041_p1 = scmp.lt.s32.totalorder %s1034_s15, %s1518_s2 }
  0x1d   : > { %p1036_p11 = scmp.ne.s32.totalorder %s1034_s15, %s1035_s16  ;;  %p1042_p2 = scmp.lt.s32.totalorder %s1040_s24, %s1035_s16 }
  0x1f   : > { %p1038_p13 = pnand %p1037_p12, %p1036_p11  ;;  %p1043_p3 = por %p1042_p2, %p1041_p1 }
  0x21   : > { %p1039_p0 = pneg %p1038_p13 }
  0x23   : > { %p1044_p4 = pnand %p1043_p3, %p1039_p0 }
  0x25   : > { %1047 = shalt.err (!%p1044_p4)
}
  0x26   : > { %984 = dma.hbm_to_vmem [thread:$0]  (!%p1273_p8), %s230_s13, 32, %s232_s9, %s1291_s14  }
  0x27   : > { %p1311_p5 = pnand %p959_p9, %p274_p10  ;;  %s949_s10 = sshll.u32 %s1271_s28, 9 }
  0x28   : > { %s969_s11 = sshll.u32 %s1195_s21, 9  ;;  %s200_s18 = scalar_lea.vmem [#allocation2], %s949_s10 }
  0x29   : > { %s206_s16 = scalar_lea.hbm %s1509_s1, %s969_s11  ;;  %s209_s24 = sshll.u32 %s200_s18, 4  ;;  %s210_s24 = int_to_ptr.vmem [resolvable:$true] %s209_s24 }
  0x2a   : > { %s207_s17 = sshll.u32 %s206_s16, 4  ;;  %s197_s25 = scalar_lea.sflag [#allocation3], %s1271_s28  ;;  %s208_s17 = int_to_ptr.hbm [resolvable:$true] %s207_s17 }
  0x2b   : > { %s1063_s8 = sshra.s32 %s208_s17, 4  ;;  %s1070_s2 = scalar_lea.hbm %s1509_s1, 1024  ;;  %s1064_s8 = int_to_ptr.hbm [resolvable:$true] %s1063_s8 }
  0x2c   : > { %s1065_s9 = scalar_lea.hbm %s1064_s8, 512  ;;  %p1071_p11 = scmp.lt.s32.totalorder %s1064_s8, %s1509_s1 }
  0x2d   : > { %p1066_p6 = scmp.ne.s32.totalorder %s1064_s8, %s1065_s9  ;;  %p1072_p13 = scmp.lt.s32.totalorder %s1070_s2, %s1065_s9 }
  0x2f   : > { %p1068_p9 = pnand %p1066_p6, %p1037_p12  ;;  %p1073_p0 = por %p1072_p13, %p1071_p11 }
  0x31   : > { %p1069_p10 = pneg %p1068_p9 }
  0x33   : > { %p1074_p1 = pnand %p1073_p0, %p1069_p10 }
  0x35   : > { %1077 = shalt.err (!%p1074_p1)
}
  0x36   : > { %s1197_s10 = smov 256   ;;  %s1198_s15 = smov 16  }
  0x37   : > { %981 = dma.hbm_to_vmem [thread:$0]  (!%p1273_p8), %s208_s17, 8192, %s210_s24, %s197_s25, %s1197_s10, %s1197_s10, %s1198_s15  }
  0x38   : > { %s246_s13 = scalar_lea.hbm %s1511_s3, %s1282_s7  ;;  %s242_s26 = scalar_lea.vmem [#allocation6], %s1279_s6 }
  0x39   : > { %s248_s21 = sshll.u32 %s246_s13, 4  ;;  %s250_s12 = sshll.u32 %s242_s26, 4  ;;  %s249_s21 = int_to_ptr.hbm [resolvable:$true] %s248_s21  ;;  %s251_s12 = int_to_ptr.vmem [resolvable:$true] %s250_s12 }
  0x3a   : > { %s1093_s2 = sshra.s32 %s249_s21, 4  ;;  %s1100_s17 = scalar_lea.hbm %s1511_s3, 4  ;;  %s1094_s2 = int_to_ptr.hbm [resolvable:$true] %s1093_s2 }
  0x3b   : > { %s1095_s8 = scalar_lea.hbm %s1094_s2, 2  ;;  %p1101_p6 = scmp.lt.s32.totalorder %s1094_s2, %s1511_s3 }
  0x3c   : > { %p1096_p2 = scmp.ne.s32.totalorder %s1094_s2, %s1095_s8  ;;  %p1102_p9 = scmp.lt.s32.totalorder %s1100_s17, %s1095_s8 }
  0x3e   : > { %p1098_p3 = pnand %p1096_p2, %p1037_p12  ;;  %p1103_p10 = por %p1102_p9, %p1101_p6 }
  0x40   : > { %p1099_p4 = pneg %p1098_p3 }
  0x42   : > { %p1104_p11 = pnand %p1103_p10, %p1099_p4 }
  0x44   : > { %1107 = shalt.err (!%p1104_p11)
}
  0x45   : > { %987 = dma.hbm_to_vmem [thread:$0]  (!%p1273_p8), %s249_s21, 32, %s251_s12, %s1291_s14  }
  0x46   : > { %s265_s15 = scalar_lea.hbm %s1512_s4, %s1282_s7  ;;  %s261_s16 = scalar_lea.vmem [#allocation7], %s1279_s6 }
  0x47   : > { %s269_s18 = sshll.u32 %s261_s16, 4  ;;  %s267_s13 = sshll.u32 %s265_s15, 4  ;;  %s270_s18 = int_to_ptr.vmem [resolvable:$true] %s269_s18  ;;  %s268_s13 = int_to_ptr.hbm [resolvable:$true] %s267_s13 }
  0x48   : > { %s258_s2 = scalar_lea.sflag [#allocation8], %s1271_s28  ;;  %s1123_s8 = sshra.s32 %s268_s13, 4  ;;  %s1124_s8 = int_to_ptr.hbm [resolvable:$true] %s1123_s8 }
  0x49   : > { %s1125_s9 = scalar_lea.hbm %s1124_s8, 2  ;;  %s1130_s21 = scalar_lea.hbm %s1512_s4, 4 }
  0x4a   : > { %p1126_p13 = scmp.ne.s32.totalorder %s1124_s8, %s1125_s9  ;;  %p1131_p2 = scmp.lt.s32.totalorder %s1124_s8, %s1512_s4 }
  0x4b   : > { %p1132_p3 = scmp.lt.s32.totalorder %s1130_s21, %s1125_s9 }
  0x4c   : > { %p1128_p0 = pnand %p1126_p13, %p1037_p12 }
  0x4d   : > { %p1133_p4 = por %p1132_p3, %p1131_p2 }
  0x4e   : > { %p1129_p1 = pneg %p1128_p0 }
  0x50   : > { %p1134_p6 = pnand %p1133_p4, %p1129_p1 }
  0x52   : > { %1137 = shalt.err (!%p1134_p6)
}
  0x53   : > { %990 = dma.hbm_to_vmem [thread:$0]  (!%p1273_p8), %s268_s13, 32, %s270_s18, %s258_s2  }
  0x54   : > { %278 = sbr.rel (%p1311_p5) target bundleno = 423 (0x1a7), region = 40  ;;  %s280_s28 = sand.u32 (!%p1311_p5), 1, %s1187_s19  }
  0x55   : > { %s960_s6 = sshll.u32 (!%p1311_p5), %s280_s28, 9  ;;  %s281_s17 = scalar_lea.sflag (!%p1311_p5), [#allocation3], %s280_s28 }
  0x56   : > { %s1369_s24 = scalar_lea.vmem (!%p1311_p5), [#allocation2], %s960_s6 }
  0x59   : > { %1170 = dma.done.wait (%p1266_p7), %s281_s17, 8192  }
  0x5a   : > { %1172 = vsyncadd (%p1266_p7), %s281_s17, 4294959104  ;;  %s290_s25 = sand.u32 1, %s1249_s22   ;;  %s1376_s29 = sshll.u32 %s280_s28, 1 }
  0x5b   : > { %s291_s30 = scalar_lea.sflag [#allocation5], %s290_s25  ;;  %s294_s26 = scalar_lea.vmem [#allocation4], %s1376_s29 }
  0x5c   : > { %1174 = dma.done.wait (%p1266_p7), %s291_s30, 64  }
  0x5d   : > { %1176 = vsyncadd (%p1266_p7), %s291_s30, 4294967232  ;;  %s304_s10 = scalar_lea.vmem [#allocation6], %s1376_s29  ;;  %s311_s15 = scalar_lea.sflag [#allocation8], %s280_s28 }
  0x5e   : > { %s314_s16 = scalar_lea.vmem [#allocation7], %s1376_s29 }
  0x5f   : > { %1178 = dma.done.wait (%p1266_p7), %s311_s15, 32  }
  0x60   : > { %1180 = vsyncadd (%p1266_p7), %s311_s15, 4294967264  ;;  %v402_v0 = vld [vmem:[%s1369_s24 + $0xf8] sm:$0xff]  ;;  %v401_v1 = vld [vmem:[%s1369_s24 + $0xf0] sm:$0xff]  ;;  %s964_s21 = sshll.u32 %s1249_s22, 1 }
  0x61   : > { %v400_v2 = vld [vmem:[%s1369_s24 + $0xe8] sm:$0xff]  ;;  %v497_v3 = vunpack.c.l.bf16 %v402_v0  ;;  %v495_v4 = vunpack.c.l.bf16 %v401_v1  ;;  %v498_v5 = vunpack.c.h.bf16 %v402_v0  ;;  %v496_v6 = vunpack.c.h.bf16 %v401_v1  ;;  %v399_v7 = vld [vmem:[%s1369_s24 + $0xe0] sm:$0xff]  ;;  %v398_v12 = vld [vmem:[%s1369_s24 + $0xd8] sm:$0xff]  ;;  %p362_p7 = scmp.lt.s32.totalorder %s964_s21, 3 }
  0x62   : > { %v493_v8 = vunpack.c.l.bf16 %v400_v2  ;;  %v491_v9 = vunpack.c.l.bf16 %v399_v7  ;;  %v494_v10 = vunpack.c.h.bf16 %v400_v2  ;;  %v492_v11 = vunpack.c.h.bf16 %v399_v7  ;;  %v397_v13 = vld [vmem:[%s1369_s24 + $0xd0] sm:$0xff]  ;;  %v396_v18 = vld [vmem:[%s1369_s24 + $0xc8] sm:$0xff]  ;;  %v395_v19 = vld [vmem:[%s1369_s24 + $0xc0] sm:$0xff] }
  0x63   : > { %609 = vmatpush.xpose.msra.mxu2 %v497_v3  ;;  %569 = vmatpush.xpose.msra.mxu0 %v495_v4  ;;  %v489_v14 = vunpack.c.l.bf16 %v398_v12  ;;  %v487_v15 = vunpack.c.l.bf16 %v397_v13  ;;  %v490_v16 = vunpack.c.h.bf16 %v398_v12  ;;  %v488_v17 = vunpack.c.h.bf16 %v397_v13  ;;  %v394_v24 = vld [vmem:[%s1369_s24 + $0xb8] sm:$0xff]  ;;  %v393_v25 = vld [vmem:[%s1369_s24 + $0xb0] sm:$0xff]  ;;  %v392_v30 = vld [vmem:[%s1369_s24 + $0xa8] sm:$0xff]  ;;  %s1526_s21 = smov (!%p362_p7, %s964_s21), 3 }
  0x64   : > { %629 = vmatpush.xpose.msra.mxu3 %v498_v5  ;;  %589 = vmatpush.xpose.msra.mxu1 %v496_v6  ;;  %v485_v20 = vunpack.c.l.bf16 %v396_v18  ;;  %v483_v21 = vunpack.c.l.bf16 %v395_v19  ;;  %v486_v22 = vunpack.c.h.bf16 %v396_v18  ;;  %v484_v23 = vunpack.c.h.bf16 %v395_v19  ;;  %v391_v31 = vld [vmem:[%s1369_s24 + $0xa0] sm:$0xff]  ;;  %v390_v36 = vld [vmem:[%s1369_s24 + $0x98] sm:$0xff]  ;;  %v389_v37 = vld [vmem:[%s1369_s24 + $0x90] sm:$0xff]  ;;  %s965_s22 = sshll.u32 %s1526_s21, 3 }
  0x65   : > { %v481_v26 = vunpack.c.l.bf16 %v394_v24  ;;  %v479_v27 = vunpack.c.l.bf16 %v393_v25  ;;  %v482_v28 = vunpack.c.h.bf16 %v394_v24  ;;  %v480_v29 = vunpack.c.h.bf16 %v393_v25  ;;  %v388_v42 = vld [vmem:[%s1369_s24 + $0x88] sm:$0xff]  ;;  %v387_v43 = vld [vmem:[%s1369_s24 + $0x80] sm:$0xff]  ;;  %v386_v48 = vld [vmem:[%s1369_s24 + $0x78] sm:$0xff]  ;;  %s1491_s28 = scalar_lea.vmem %s1513_s5, %s965_s22 }
  0x66   : > { %v477_v32 = vunpack.c.l.bf16 %v392_v30  ;;  %v475_v33 = vunpack.c.l.bf16 %v391_v31  ;;  %v478_v34 = vunpack.c.h.bf16 %v392_v30  ;;  %v476_v35 = vunpack.c.h.bf16 %v391_v31  ;;  %v385_v49 = vld [vmem:[%s1369_s24 + $0x70] sm:$0xff]  ;;  %v384_v54 = vld [vmem:[%s1369_s24 + $0x68] sm:$0xff]  ;;  %v383_v55 = vld [vmem:[%s1369_s24 + $0x60] sm:$0xff] }
  0x67   : > { %610 = vmatpush.xpose.msra.mxu2 %v493_v8  ;;  %570 = vmatpush.xpose.msra.mxu0 %v491_v9  ;;  %v473_v38 = vunpack.c.l.bf16 %v390_v36  ;;  %v471_v39 = vunpack.c.l.bf16 %v389_v37  ;;  %v474_v40 = vunpack.c.h.bf16 %v390_v36  ;;  %v472_v41 = vunpack.c.h.bf16 %v389_v37  ;;  %v382_v60 = vld [vmem:[%s1369_s24 + $0x58] sm:$0xff]  ;;  %v381_v61 = vld [vmem:[%s1369_s24 + $0x50] sm:$0xff]  ;;  %v380_v2 = vld [vmem:[%s1369_s24 + $0x48] sm:$0xff] }
  0x68   : > { %630 = vmatpush.xpose.msra.mxu3 %v494_v10  ;;  %590 = vmatpush.xpose.msra.mxu1 %v492_v11  ;;  %v469_v44 = vunpack.c.l.bf16 %v388_v42  ;;  %v467_v45 = vunpack.c.l.bf16 %v387_v43  ;;  %v470_v46 = vunpack.c.h.bf16 %v388_v42  ;;  %v468_v47 = vunpack.c.h.bf16 %v387_v43  ;;  %v379_v3 = vld [vmem:[%s1369_s24 + $0x40] sm:$0xff]  ;;  %v378_v8 = vld [vmem:[%s1369_s24 + $0x38] sm:$0xff]  ;;  %v377_v9 = vld [vmem:[%s1369_s24 + $0x30] sm:$0xff] }
  0x69   : > { %v465_v50 = vunpack.c.l.bf16 %v386_v48  ;;  %v463_v51 = vunpack.c.l.bf16 %v385_v49  ;;  %v466_v52 = vunpack.c.h.bf16 %v386_v48  ;;  %v464_v53 = vunpack.c.h.bf16 %v385_v49  ;;  %v432_v36 = vld [vmem:[%s1369_s24 + $0x1e8] sm:$0xff]  ;;  %v1433_v42 = vld [vmem:[%s1508_s0] sm:$0xff] }
  0x6a   : > { %v461_v56 = vunpack.c.l.bf16 %v384_v54  ;;  %v459_v57 = vunpack.c.l.bf16 %v383_v55  ;;  %v462_v58 = vunpack.c.h.bf16 %v384_v54  ;;  %v460_v59 = vunpack.c.h.bf16 %v383_v55  ;;  %v1447_v49 = vld [vmem:[%s1508_s0 + $0x8] sm:$0xff]  ;;  %v427_v54 = vld [vmem:[%s1369_s24 + $0x1c0] sm:$0xff] }
  0x6b   : > { %611 = vmatpush.xpose.msra.mxu2 %v489_v14  ;;  %571 = vmatpush.xpose.msra.mxu0 %v487_v15  ;;  %v457_v62 = vunpack.c.l.bf16 %v382_v60  ;;  %v455_v63 = vunpack.c.l.bf16 %v381_v61  ;;  %v458_v0 = vunpack.c.h.bf16 %v382_v60  ;;  %v456_v1 = vunpack.c.h.bf16 %v381_v61  ;;  %v376_v14 = vld [vmem:[%s1369_s24 + $0x28] sm:$0xff]  ;;  %v375_v15 = vld [vmem:[%s1369_s24 + $0x20] sm:$0xff]  ;;  %v425_v60 = vld [vmem:[%s1369_s24 + $0x1b0] sm:$0xff] }
  0x6c   : > { %631 = vmatpush.xpose.msra.mxu3 %v490_v16  ;;  %591 = vmatpush.xpose.msra.mxu1 %v488_v17  ;;  %v453_v4 = vunpack.c.l.bf16 %v380_v2  ;;  %v451_v5 = vunpack.c.l.bf16 %v379_v3  ;;  %v454_v6 = vunpack.c.h.bf16 %v380_v2  ;;  %v452_v7 = vunpack.c.h.bf16 %v379_v3  ;;  %v423_v2 = vld [vmem:[%s1369_s24 + $0x1a0] sm:$0xff] }
  0x6d   : > { %v449_v10 = vunpack.c.l.bf16 %v378_v8  ;;  %v447_v11 = vunpack.c.l.bf16 %v377_v9  ;;  %v450_v12 = vunpack.c.h.bf16 %v378_v8  ;;  %v448_v13 = vunpack.c.h.bf16 %v377_v9  ;;  %v421_v8 = vld [vmem:[%s1369_s24 + $0x190] sm:$0xff] }
  0x6e   : > { %v445_v16 = vunpack.c.l.bf16 %v376_v14  ;;  %v443_v17 = vunpack.c.l.bf16 %v375_v15  ;;  %v446_v18 = vunpack.c.h.bf16 %v376_v14  ;;  %v444_v19 = vunpack.c.h.bf16 %v375_v15  ;;  %v419_v14 = vld [vmem:[%s1369_s24 + $0x180] sm:$0xff] }
  0x6f   : > { %612 = vmatpush.xpose.msra.mxu2 %v485_v20  ;;  %572 = vmatpush.xpose.msra.mxu0 %v483_v21  ;;  %v374_v20 = vld [vmem:[%s1369_s24 + $0x18] sm:$0xff]  ;;  %v373_v21 = vld [vmem:[%s1369_s24 + $0x10] sm:$0xff]  ;;  %v548_v61 = vunpack.c.h.bf16 %v427_v54  ;;  %v544_v3 = vunpack.c.h.bf16 %v425_v60  ;;  %v540_v9 = vunpack.c.h.bf16 %v423_v2  ;;  %v536_v15 = vunpack.c.h.bf16 %v421_v8 }
  0x70   : > { %632 = vmatpush.xpose.msra.mxu3 %v486_v22  ;;  %592 = vmatpush.xpose.msra.mxu1 %v484_v23  ;;  %v441_v22 = vunpack.c.l.bf16 %v374_v20  ;;  %v439_v23 = vunpack.c.l.bf16 %v373_v21  ;;  %v442_v24 = vunpack.c.h.bf16 %v374_v20  ;;  %v440_v25 = vunpack.c.h.bf16 %v373_v21  ;;  %v417_v20 = vld [vmem:[%s1369_s24 + $0x170] sm:$0xff] }
  0x71   : > { %v532_v21 = vunpack.c.h.bf16 %v419_v14 }
  0x73   : > { %613 = vmatpush.xpose.msra.mxu2 %v481_v26  ;;  %573 = vmatpush.xpose.msra.mxu0 %v479_v27  ;;  %v372_v26 = vld [vmem:[%s1369_s24 + $0x8] sm:$0xff]  ;;  %v371_v27 = vld [vmem:[%s1369_s24] sm:$0xff] }
  0x74   : > { %633 = vmatpush.xpose.msra.mxu3 %v482_v28  ;;  %593 = vmatpush.xpose.msra.mxu1 %v480_v29  ;;  %v434_v28 = vld [vmem:[%s1369_s24 + $0x1f8] sm:$0xff]  ;;  %v433_v29 = vld [vmem:[%s1369_s24 + $0x1f0] sm:$0xff]  ;;  %v437_v30 = vunpack.c.l.bf16 %v372_v26  ;;  %v435_v31 = vunpack.c.l.bf16 %v371_v27  ;;  %v436_v37 = vunpack.c.h.bf16 %v371_v27  ;;  %v528_v27 = vunpack.c.h.bf16 %v417_v20 }
  0x77   : > { %614 = vmatpush.xpose.msra.mxu2 %v477_v32  ;;  %574 = vmatpush.xpose.msra.mxu0 %v475_v33  ;;  %v561_v32 = vunpack.c.l.bf16 %v434_v28  ;;  %v438_v33 = vunpack.c.h.bf16 %v372_v26  ;;  %v415_v26 = vld [vmem:[%s1369_s24 + $0x160] sm:$0xff] }
  0x78   : > { %634 = vmatpush.xpose.msra.mxu3 %v478_v34  ;;  %594 = vmatpush.xpose.msra.mxu1 %v476_v35  ;;  %v559_v34 = vunpack.c.l.bf16 %v433_v29  ;;  %v562_v35 = vunpack.c.h.bf16 %v434_v28 }
  0x7b   : > { %615 = vmatpush.xpose.msra.mxu2 %v473_v38  ;;  %575 = vmatpush.xpose.msra.mxu0 %v471_v39  ;;  %v431_v38 = vld [vmem:[%s1369_s24 + $0x1e0] sm:$0xff]  ;;  %v560_v39 = vunpack.c.h.bf16 %v433_v29  ;;  %v523_v29 = vunpack.c.l.bf16 %v415_v26 }
  0x7c   : > { %635 = vmatpush.xpose.msra.mxu3 %v474_v40  ;;  %595 = vmatpush.xpose.msra.mxu1 %v472_v41  ;;  %v1428_v40 = vld [vmem:[%s1508_s0 + $0x10] sm:$0xff]  ;;  %v557_v41 = vunpack.c.l.bf16 %v432_v36  ;;  %v555_v43 = vunpack.c.l.bf16 %v431_v38  ;;  %v556_v48 = vunpack.c.h.bf16 %v431_v38  ;;  %v411_v38 = vld [vmem:[%s1369_s24 + $0x140] sm:$0xff] }
  0x7f   : > { %616 = vmatpush.xpose.msra.mxu2 %v469_v44  ;;  %576 = vmatpush.xpose.msra.mxu0 %v467_v45  ;;  %v558_v44 = vunpack.c.h.bf16 %v432_v36  ;;  %v1438_v45 = vld [vmem:[%s1508_s0 + $0x18] sm:$0xff] }
  0x80   : > { %636 = vmatpush.xpose.msra.mxu3 %v470_v46  ;;  %596 = vmatpush.xpose.msra.mxu1 %v468_v47  ;;  %v430_v46 = vld [vmem:[%s1369_s24 + $0x1d8] sm:$0xff]  ;;  %v429_v47 = vld [vmem:[%s1369_s24 + $0x1d0] sm:$0xff] }
  0x81   : > { %v552_v55 = vunpack.c.h.bf16 %v429_v47 }
  0x83   : > { %617 = vmatpush.xpose.msra.mxu2 %v465_v50  ;;  %577 = vmatpush.xpose.msra.mxu0 %v463_v51  ;;  %v553_v50 = vunpack.c.l.bf16 %v430_v46  ;;  %v551_v51 = vunpack.c.l.bf16 %v429_v47  ;;  %v409_v47 = vld [vmem:[%s1369_s24 + $0x130] sm:$0xff] }
  0x84   : > { %637 = vmatpush.xpose.msra.mxu3 %v466_v52  ;;  %597 = vmatpush.xpose.msra.mxu1 %v464_v53  ;;  %v554_v52 = vunpack.c.h.bf16 %v430_v46  ;;  %v428_v53 = vld [vmem:[%s1369_s24 + $0x1c8] sm:$0xff]  ;;  %v410_v46 = vld [vmem:[%s1369_s24 + $0x138] sm:$0xff] }
  0x87   : > { %618 = vmatpush.xpose.msra.mxu2 %v461_v56  ;;  %578 = vmatpush.xpose.msra.mxu0 %v459_v57  ;;  %v549_v56 = vunpack.c.l.bf16 %v428_v53  ;;  %v547_v57 = vunpack.c.l.bf16 %v427_v54  ;;  %v407_v54 = vld [vmem:[%s1369_s24 + $0x120] sm:$0xff] }
  0x88   : > { %638 = vmatpush.xpose.msra.mxu3 %v462_v58  ;;  %598 = vmatpush.xpose.msra.mxu1 %v460_v59  ;;  %v550_v58 = vunpack.c.h.bf16 %v428_v53  ;;  %v426_v59 = vld [vmem:[%s1369_s24 + $0x1b8] sm:$0xff]  ;;  %v408_v53 = vld [vmem:[%s1369_s24 + $0x128] sm:$0xff] }
  0x8b   : > { %619 = vmatpush.xpose.msra.mxu2 %v457_v62  ;;  %579 = vmatpush.xpose.msra.mxu0 %v455_v63  ;;  %v545_v62 = vunpack.c.l.bf16 %v426_v59  ;;  %v543_v63 = vunpack.c.l.bf16 %v425_v60  ;;  %v405_v60 = vld [vmem:[%s1369_s24 + $0x110] sm:$0xff] }
  0x8c   : > { %639 = vmatpush.xpose.msra.mxu3 %v458_v0  ;;  %599 = vmatpush.xpose.msra.mxu1 %v456_v1  ;;  %v546_v0 = vunpack.c.h.bf16 %v426_v59  ;;  %v424_v1 = vld [vmem:[%s1369_s24 + $0x1a8] sm:$0xff]  ;;  %v406_v59 = vld [vmem:[%s1369_s24 + $0x118] sm:$0xff] }
  0x8f   : > { %620 = vmatpush.xpose.msra.mxu2 %v453_v4  ;;  %580 = vmatpush.xpose.msra.mxu0 %v451_v5  ;;  %v541_v4 = vunpack.c.l.bf16 %v424_v1  ;;  %v539_v5 = vunpack.c.l.bf16 %v423_v2  ;;  %v403_v2 = vld [vmem:[%s1369_s24 + $0x100] sm:$0xff] }
  0x90   : > { %640 = vmatpush.xpose.msra.mxu3 %v454_v6  ;;  %600 = vmatpush.xpose.msra.mxu1 %v452_v7  ;;  %v542_v6 = vunpack.c.h.bf16 %v424_v1  ;;  %v422_v7 = vld [vmem:[%s1369_s24 + $0x198] sm:$0xff]  ;;  %v404_v1 = vld [vmem:[%s1369_s24 + $0x108] sm:$0xff] }
  0x93   : > { %621 = vmatpush.xpose.msra.mxu2 %v449_v10  ;;  %581 = vmatpush.xpose.msra.mxu0 %v447_v11  ;;  %v537_v10 = vunpack.c.l.bf16 %v422_v7  ;;  %v535_v11 = vunpack.c.l.bf16 %v421_v8  ;;  %v563_v8 = vld [vmem:[%s294_s26] sm:$0x3] }
  0x94   : > { %641 = vmatpush.xpose.msra.mxu3 %v450_v12  ;;  %601 = vmatpush.xpose.msra.mxu1 %v448_v13  ;;  %v538_v12 = vunpack.c.h.bf16 %v422_v7  ;;  %v420_v13 = vld [vmem:[%s1369_s24 + $0x188] sm:$0xff]  ;;  %v500_v7 = vunpack.c.h.bf16 %v403_v2 }
  0x97   : > { %622 = vmatpush.xpose.msra.mxu2 %v445_v16  ;;  %582 = vmatpush.xpose.msra.mxu0 %v443_v17  ;;  %v533_v16 = vunpack.c.l.bf16 %v420_v13  ;;  %v531_v17 = vunpack.c.l.bf16 %v419_v14 }
  0x98   : > { %642 = vmatpush.xpose.msra.mxu3 %v446_v18  ;;  %602 = vmatpush.xpose.msra.mxu1 %v444_v19  ;;  %v534_v18 = vunpack.c.h.bf16 %v420_v13  ;;  %v418_v19 = vld [vmem:[%s1369_s24 + $0x178] sm:$0xff] }
  0x9b   : > { %623 = vmatpush.xpose.msra.mxu2 %v441_v22  ;;  %583 = vmatpush.xpose.msra.mxu0 %v439_v23  ;;  %v529_v22 = vunpack.c.l.bf16 %v418_v19  ;;  %v527_v23 = vunpack.c.l.bf16 %v417_v20 }
  0x9c   : > { %643 = vmatpush.xpose.msra.mxu3 %v442_v24  ;;  %603 = vmatpush.xpose.msra.mxu1 %v440_v25  ;;  %v530_v24 = vunpack.c.h.bf16 %v418_v19  ;;  %v416_v25 = vld [vmem:[%s1369_s24 + $0x168] sm:$0xff] }
  0x9d   : > { %v525_v28 = vunpack.c.l.bf16 %v416_v25 }
  0x9f   : > { %624 = vmatpush.xpose.msra.mxu2 %v437_v30  ;;  %584 = vmatpush.xpose.msra.mxu0 %v435_v31  ;;  %v526_v30 = vunpack.c.h.bf16 %v416_v25  ;;  %v414_v31 = vld [vmem:[%s1369_s24 + $0x158] sm:$0xff] }
  0xa0   : > { %644 = vmatpush.xpose.msra.mxu3 %v438_v33  ;;  %604 = vmatpush.xpose.msra.mxu1 %v436_v37  ;;  %v524_v33 = vunpack.c.h.bf16 %v415_v26  ;;  %v522_v36 = vunpack.c.h.bf16 %v414_v31  ;;  %v412_v37 = vld [vmem:[%s1369_s24 + $0x148] sm:$0xff] }
  0xa2   : > { %625 = vmatmul.f32.vlgmr.msra.gmra.mxu2 %v1428_v40  ;;  %585 = vmatmul.f32.vlgmr.msra.gmra.mxu0 %v1433_v42 }
  0xa3   : > { %689 = vmatpush.xpose.msrb.mxu2 %v561_v32  ;;  %649 = vmatpush.xpose.msrb.mxu0 %v559_v34  ;;  %v413_v32 = vld [vmem:[%s1369_s24 + $0x150] sm:$0xff]  ;;  %v521_v34 = vunpack.c.l.bf16 %v414_v31 }
  0xa4   : > { %709 = vmatpush.xpose.msrb.mxu3 %v562_v35  ;;  %669 = vmatpush.xpose.msrb.mxu1 %v560_v39  ;;  %v519_v35 = vunpack.c.l.bf16 %v413_v32  ;;  %v520_v39 = vunpack.c.h.bf16 %v413_v32 }
  0xa5   : > { %645 = vmatmul.f32.vlgmr.msra.gmra.mxu3 %v1438_v45  ;;  %605 = vmatmul.f32.vlgmr.msra.gmra.mxu1 %v1447_v49 }
  0xa7   : > { %690 = vmatpush.xpose.msrb.mxu2 %v557_v41  ;;  %650 = vmatpush.xpose.msrb.mxu0 %v555_v43  ;;  %v517_v41 = vunpack.c.l.bf16 %v412_v37  ;;  %v515_v43 = vunpack.c.l.bf16 %v411_v38 }
  0xa8   : > { %710 = vmatpush.xpose.msrb.mxu3 %v558_v44  ;;  %670 = vmatpush.xpose.msrb.mxu1 %v556_v48  ;;  %v518_v44 = vunpack.c.h.bf16 %v412_v37  ;;  %v516_v48 = vunpack.c.h.bf16 %v411_v38 }
  0xab   : > { %691 = vmatpush.xpose.msrb.mxu2 %v553_v50  ;;  %651 = vmatpush.xpose.msrb.mxu0 %v551_v51  ;;  %v513_v50 = vunpack.c.l.bf16 %v410_v46  ;;  %v511_v51 = vunpack.c.l.bf16 %v409_v47 }
  0xac   : > { %711 = vmatpush.xpose.msrb.mxu3 %v554_v52  ;;  %671 = vmatpush.xpose.msrb.mxu1 %v552_v55  ;;  %v514_v52 = vunpack.c.h.bf16 %v410_v46  ;;  %v512_v55 = vunpack.c.h.bf16 %v409_v47  ;;  %v792_v46 = vld [vmem:[%s304_s10] sm:$0x3]  ;;  %v566_v47 = vperm.slane %v563_v8, 1 }
  0xaf   : > { %692 = vmatpush.xpose.msrb.mxu2 %v549_v56  ;;  %652 = vmatpush.xpose.msrb.mxu0 %v547_v57  ;;  %v509_v56 = vunpack.c.l.bf16 %v408_v53  ;;  %v507_v57 = vunpack.c.l.bf16 %v407_v54 }
  0xb0   : > { %712 = vmatpush.xpose.msrb.mxu3 %v550_v58  ;;  %672 = vmatpush.xpose.msrb.mxu1 %v548_v61  ;;  %v510_v58 = vunpack.c.h.bf16 %v408_v53  ;;  %v508_v61 = vunpack.c.h.bf16 %v407_v54 }
  0xb3   : > { %693 = vmatpush.xpose.msrb.mxu2 %v545_v62  ;;  %653 = vmatpush.xpose.msrb.mxu0 %v543_v63  ;;  %v505_v62 = vunpack.c.l.bf16 %v406_v59  ;;  %v503_v63 = vunpack.c.l.bf16 %v405_v60 }
  0xb4   : > { %713 = vmatpush.xpose.msrb.mxu3 %v546_v0  ;;  %673 = vmatpush.xpose.msrb.mxu1 %v544_v3  ;;  %v506_v0 = vunpack.c.h.bf16 %v406_v59  ;;  %v504_v3 = vunpack.c.h.bf16 %v405_v60 }
  0xb7   : > { %694 = vmatpush.xpose.msrb.mxu2 %v541_v4  ;;  %654 = vmatpush.xpose.msrb.mxu0 %v539_v5  ;;  %v501_v4 = vunpack.c.l.bf16 %v404_v1  ;;  %v499_v5 = vunpack.c.l.bf16 %v403_v2 }
  0xb8   : > { %714 = vmatpush.xpose.msrb.mxu3 %v542_v6  ;;  %674 = vmatpush.xpose.msrb.mxu1 %v540_v9  ;;  %v502_v6 = vunpack.c.h.bf16 %v404_v1  ;;  %v1199_v9 = vmov 8.0  }
  0xb9   : > { %1027 = vrcp.f32 %v1199_v9 }
  0xbb   : > { %695 = vmatpush.xpose.msrb.mxu2 %v537_v10  ;;  %655 = vmatpush.xpose.msrb.mxu0 %v535_v11  ;;  %v565_v10 = vperm.slane %v563_v8, 0 }
  0xbc   : > { %715 = vmatpush.xpose.msrb.mxu3 %v538_v12  ;;  %675 = vmatpush.xpose.msrb.mxu1 %v536_v15 }
  0xbf   : > { %696 = vmatpush.xpose.msrb.mxu2 %v533_v16  ;;  %656 = vmatpush.xpose.msrb.mxu0 %v531_v17  ;;  %v1028_v11 = vpop.eup %1027 }
  0xc0   : > { %716 = vmatpush.xpose.msrb.mxu3 %v534_v18  ;;  %676 = vmatpush.xpose.msrb.mxu1 %v532_v21  ;;  %v742_v15 = vmul.f32 8.0, %v1028_v11  ;;  %vm746_vm0 = vweird.f32 %v1028_v11 }
  0xc2   : > { %v743_v19 = vsub.f32 1.0, %v742_v15 }
  0xc3   : > { %697 = vmatpush.xpose.msrb.mxu2 %v529_v22  ;;  %657 = vmatpush.xpose.msrb.mxu0 %v527_v23 }
  0xc4   : > { %717 = vmatpush.xpose.msrb.mxu3 %v530_v24  ;;  %677 = vmatpush.xpose.msrb.mxu1 %v528_v27 }
  0xc7   : > { %698 = vmatpush.xpose.msrb.mxu2 %v525_v28  ;;  %658 = vmatpush.xpose.msrb.mxu0 %v523_v29 }
  0xc8   : > { %718 = vmatpush.xpose.msrb.mxu3 %v526_v30  ;;  %678 = vmatpush.xpose.msrb.mxu1 %v524_v33 }
  0xcb   : > { %699 = vmatpush.xpose.msrb.mxu2 %v521_v34  ;;  %659 = vmatpush.xpose.msrb.mxu0 %v519_v35 }
  0xcc   : > { %719 = vmatpush.xpose.msrb.mxu3 %v522_v36  ;;  %679 = vmatpush.xpose.msrb.mxu1 %v520_v39 }
  0xcf   : > { %700 = vmatpush.xpose.msrb.mxu2 %v517_v41  ;;  %660 = vmatpush.xpose.msrb.mxu0 %v515_v43 }
  0xd0   : > { %720 = vmatpush.xpose.msrb.mxu3 %v518_v44  ;;  %680 = vmatpush.xpose.msrb.mxu1 %v516_v48 }
  0xd3   : > { %701 = vmatpush.xpose.msrb.mxu2 %v513_v50  ;;  %661 = vmatpush.xpose.msrb.mxu0 %v511_v51  ;;  %v800_v50 = vld [vmem:[%s314_s16] sm:$0x3]  ;;  %v794_v51 = vperm.slane %v792_v46, 0 }
  0xd4   : > { %721 = vmatpush.xpose.msrb.mxu3 %v514_v52  ;;  %681 = vmatpush.xpose.msrb.mxu1 %v512_v55  ;;  %v802_v55 = vperm.slane %v800_v50, 0 }
  0xd7   : > { %702 = vmatpush.xpose.msrb.mxu2 %v509_v56  ;;  %662 = vmatpush.xpose.msrb.mxu0 %v507_v57 }
  0xd8   : > { %722 = vmatpush.xpose.msrb.mxu3 %v510_v58  ;;  %682 = vmatpush.xpose.msrb.mxu1 %v508_v61 }
  0xdb   : > { %703 = vmatpush.xpose.msrb.mxu2 %v505_v62  ;;  %663 = vmatpush.xpose.msrb.mxu0 %v503_v63 }
  0xdc   : > { %723 = vmatpush.xpose.msrb.mxu3 %v506_v0  ;;  %683 = vmatpush.xpose.msrb.mxu1 %v504_v3 }
  0xdf   : > { %704 = vmatpush.xpose.msrb.mxu2 %v501_v4  ;;  %664 = vmatpush.xpose.msrb.mxu0 %v499_v5 }
  0xe0   : > { %724 = vmatpush.xpose.msrb.mxu3 %v502_v6  ;;  %684 = vmatpush.xpose.msrb.mxu1 %v500_v7 }
  0xe2   : > { %705 = vmatmul.f32.vlgmr.msrb.gmra.mxu2 %v1428_v40  ;;  %665 = vmatmul.f32.vlgmr.msrb.gmra.mxu0 %v1433_v42 }
  0xe3   : > { %725 = vmatmul.f32.vlgmr.msrb.gmra.mxu3 %v1438_v45  ;;  %685 = vmatmul.f32.vlgmr.msrb.gmra.mxu1 %v1447_v49  ;;  %v744_v45 = vmul.f32 %v1028_v11, %v743_v19 }
  0xe5   : > { %v745_v22 = vadd.f32 %v1028_v11, %v744_v45 }
  0xe7   : > { %v747_v25 = vsel %vm746_vm0, %v1028_v11, %v745_v22 }
 0x11f   : > { %v586_v12 = vpop.f32.mrf.mxu0 }
 0x120   : > { %v587_v13 = vadd.f32 %v586_v12, %v565_v10 }
 0x122   : > { %v606_v14 = vpop.f32.mrf.mxu1 }
 0x123   : > { %v607_v16 = vadd.f32 %v606_v14, %v587_v13 }
 0x125   : > { %v626_v17 = vpop.f32.mrf.mxu2 }
 0x126   : > { %v627_v40 = vadd.f32 %v626_v17, %v607_v16 }
 0x128   : > { %v646_v18 = vpop.f32.mrf.mxu3 }
 0x129   : > { %v647_v42 = vadd.f32 %v646_v18, %v627_v40 }
 0x12b   : > { %v729_v20 = vrot.slane %v647_v42, 4 }
 0x12d   : > { %v730_v21 = vadd.f32 %v729_v20, %v647_v42 }
 0x12f   : > { %v731_v49 = vrot.slane %v730_v21, 2 }
 0x131   : > { %v732_v23 = vadd.f32 %v731_v49, %v730_v21  ;;  %v795_v49 = vperm.slane %v792_v46, 1 }
 0x133   : > { %v733_v24 = vrot.slane %v732_v23, 1 }
 0x135   : > { %v734_v26 = vadd.f32 %v733_v24, %v732_v23  ;;  %v803_v24 = vperm.slane %v800_v50, 1 }
 0x137   : > { %v748_v27 = vmul.f32 %v747_v25, %v734_v26 }
 0x139   : > { %v750_v28 = vsub.f32 %v647_v42, %v748_v27 }
 0x13b   : > { %v752_v29 = vmul.f32 %v750_v28, %v750_v28 }
 0x13d   : > { %v754_v30 = vrot.slane %v752_v29, 4 }
 0x13f   : > { %v755_v31 = vadd.f32 %v754_v30, %v752_v29 }
 0x141   : > { %v756_v32 = vrot.slane %v755_v31, 2 }
 0x143   : > { %v757_v33 = vadd.f32 %v756_v32, %v755_v31 }
 0x145   : > { %v758_v34 = vrot.slane %v757_v33, 1 }
 0x147   : > { %v759_v35 = vadd.f32 %v758_v34, %v757_v33 }
 0x149   : > { %v766_v36 = vmul.f32 %v759_v35, %v747_v25 }
 0x14b   : > { %v768_v37 = vadd.f32 0.0001, %v766_v36 }
 0x14d   : > { %1029 = vrsqrt.f32 %v768_v37  ;;  %vm776_vm1 = vweird.f32 %v768_v37 }
 0x153   : > { %v1030_v38 = vpop.eup %1029 }
 0x154   : > { %v771_v39 = vmul.f32 %v1030_v38, %v768_v37  ;;  %vm777_vm2 = vweird.f32 %v1030_v38 }
 0x155   : > { %vm778_vm3 = vmor %vm776_vm1, %vm777_vm2 }
 0x156   : > { %v772_v41 = vmul.f32 %v1030_v38, %v771_v39 }
 0x158   : > { %v773_v43 = vmul.f32 0.5, %v772_v41 }
 0x15a   : > { %v774_v44 = vsub.f32 1.5, %v773_v43 }
 0x15c   : > { %v775_v48 = vmul.f32 %v1030_v38, %v774_v44 }
 0x15e   : > { %v779_v52 = vsel %vm778_vm3, %v1030_v38, %v775_v48 }
 0x15f   : > { %v666_v53 = vpop.f32.mrf.mxu0  ;;  %v790_v54 = vmul.f32 %v779_v52, %v750_v28 }
 0x160   : > { %v667_v56 = vadd.f32 %v666_v53, %v566_v47  ;;  %v686_v57 = vpop.f32.mrf.mxu1 }
 0x161   : > { %v798_v58 = vmul.f32 %v794_v51, %v790_v54 }
 0x162   : > { %v687_v59 = vadd.f32 %v686_v57, %v667_v56 }
 0x163   : > { %v806_v60 = vadd.f32 %v802_v55, %v798_v58 }
 0x165   : > { %v706_v61 = vpop.f32.mrf.mxu2  ;;  %v808_v0 = vmax.f32 %v806_v60, 0.0 }
 0x166   : > { %v707_v62 = vadd.f32 %v706_v61, %v687_v59  ;;  %v726_v63 = vpop.f32.mrf.mxu3 }
 0x167   : > { %810 = vst [vmem:[%s1491_s28] sm:$0xff] %v808_v0 }
 0x168   : > { %v727_v1 = vadd.f32 %v726_v63, %v707_v62 }
 0x16a   : > { %v735_v2 = vrot.slane %v727_v1, 4 }
 0x16c   : > { %v736_v3 = vadd.f32 %v735_v2, %v727_v1 }
 0x16e   : > { %v737_v4 = vrot.slane %v736_v3, 2 }
 0x170   : > { %v738_v5 = vadd.f32 %v737_v4, %v736_v3 }
 0x172   : > { %v739_v6 = vrot.slane %v738_v5, 1 }
 0x174   : > { %v740_v7 = vadd.f32 %v739_v6, %v738_v5 }
 0x176   : > { %v749_v8 = vmul.f32 %v747_v25, %v740_v7 }
 0x178   : > { %v751_v9 = vsub.f32 %v727_v1, %v749_v8 }
 0x17a   : > { %v753_v10 = vmul.f32 %v751_v9, %v751_v9 }
 0x17c   : > { %v760_v11 = vrot.slane %v753_v10, 4 }
 0x17e   : > { %v761_v12 = vadd.f32 %v760_v11, %v753_v10 }
 0x180   : > { %v762_v13 = vrot.slane %v761_v12, 2 }
 0x182   : > { %v763_v14 = vadd.f32 %v762_v13, %v761_v12 }
 0x184   : > { %v764_v15 = vrot.slane %v763_v14, 1 }
 0x186   : > { %v765_v16 = vadd.f32 %v764_v15, %v763_v14 }
 0x188   : > { %v767_v17 = vmul.f32 %v765_v16, %v747_v25 }
 0x18a   : > { %v769_v40 = vadd.f32 0.0001, %v767_v17 }
 0x18c   : > { %1031 = vrsqrt.f32 %v769_v40  ;;  %vm786_vm5 = vweird.f32 %v769_v40 }
 0x192   : > { %v1032_v18 = vpop.eup %1031 }
 0x193   : > { %v781_v19 = vmul.f32 %v1032_v18, %v769_v40  ;;  %vm787_vm4 = vweird.f32 %v1032_v18 }
 0x194   : > { %vm788_vm6 = vmor %vm786_vm5, %vm787_vm4 }
 0x195   : > { %v782_v42 = vmul.f32 %v1032_v18, %v781_v19 }
 0x197   : > { %v783_v20 = vmul.f32 0.5, %v782_v42 }
 0x199   : > { %v784_v45 = vsub.f32 1.5, %v783_v20 }
 0x19b   : > { %v785_v21 = vmul.f32 %v1032_v18, %v784_v45 }
 0x19d   : > { %v789_v22 = vsel %vm788_vm6, %v1032_v18, %v785_v21 }
 0x19e   : > { %v791_v23 = vmul.f32 %v789_v22, %v751_v9 }
 0x1a0   : > { %v799_v26 = vmul.f32 %v795_v49, %v791_v23 }
 0x1a2   : > { %v807_v27 = vadd.f32 %v803_v24, %v799_v26 }
 0x1a4   : > { %v809_v28 = vmax.f32 %v807_v27, 0.0 }
 0x1a6   : > { %811 = vst [vmem:[%s1491_s28 + $0x8] sm:$0xff] %v809_v28 }
 0x1a7 PF: > { %s1520_s6 = sld [smem:[#allocation12_spill]]  ;;  %p21_p8 = scmp.ge.s32.totalorder %s1252_s23, 4  }
 0x1a8   : > { %s1521_s18 = smov %s1187_s19  ;;  %s1522_s19 = smov %s1191_s20 }
 0x1a9   : > { %s1524_s21 = smov %s1252_s23  ;;  %23 = sbr.rel (!%p21_p8) target bundleno = 9 (0x9), region = 117 }
 0x1ad   : > { %s1523_s20 = smov %s1520_s6 }
 0x1ae   :  { %834 = vsyncpa [#allocation3], 1 }
 0x1af   :  { %836 = vsyncpa [#allocation3 + $0x1], 1 }
 0x1b0   :  { %837 = vsyncpa [#allocation5], 1 }
 0x1b1   :  { %839 = vsyncpa [#allocation5 + $0x1], 1 }
 0x1b2   :  { %840 = vsyncpa [#allocation8], 1 }
 0x1b3   :  { %842 = vsyncpa [#allocation8 + $0x1], 1 }

// kernel: binaryconnect_forward.4
= control target key start
LH: loop header
LB: loop body
LE: loop exit
PB: predicated region body
PF: predicated region fallthrough
CT: control target
= control target key end

     0   :  { %10 = vsyncpa [#allocation3], 0  ;;  %s1418_s0 = inlined_call_operand.hbm [shape: f32[8,32], index: 0, kind: input, shape index: {}]   ;;  %s1419_s1 = inlined_call_operand.vmem [shape: bf16[512,32], index: 1, kind: input, shape index: {}]   ;;  %s1420_s2 = inlined_call_operand.hbm [shape: f32[1,512], index: 2, kind: input, shape index: {}]   ;;  %s1421_s3 = inlined_call_operand.hbm [shape: f32[1,512], index: 3, kind: input, shape index: {}]   ;;  %s1422_s4 = inlined_call_operand.hbm [shape: f32[1,512], index: 4, kind: input, shape index: {}]   ;;  %s1423_s5 = inlined_call_operand.vmem [shape: f32[8,512], index: 5, kind: output, shape index: {}]  }
   0x1   :  { %11 = vsyncpa [#allocation5], 0 }
   0x2   :  { %13 = vsyncpa [#allocation5 + $0x1], 0 }
   0x3   :  { %14 = vsyncpa [#allocation8], 0 }
   0x4   :  { %16 = vsyncpa [#allocation8 + $0x1], 0  ;;  %s1186_s18 = smov 0   ;;  %s1188_s19 = smov 0  }
   0x5   :  { %s1190_s20 = smov 0   ;;  %s1192_s21 = smov 0  }
   0x6 LB: > { %s1207_s22 = sadd.s32 1, %s1152_s21   ;;  %s76_s23 = sadd.s32 1, %s1148_s20  ;;  %s1152_s21 = sphi %s1192_s21, %s1430_s21   ;;  %s1148_s20 = sphi %s1190_s20, %s1429_s20   ;;  %s1144_s19 = sphi %s1188_s19, %s1428_s19   ;;  %s1140_s18 = sphi %s1186_s18, %s1427_s18  }
   0x7   : > { %s73_s24 = ssub.s32 %s1152_s21, %s1207_s22  ;;  %p83_p0 = scmp.ne.s32.totalorder %s1148_s20, %s1144_s19 }
   0x8   : > { %p74_p1 = scmp.eq.s32.totalorder %s73_s24, 0  ;;  %p84_p2 = scmp.eq.s32.totalorder %s1152_s21, 0 }
   0x9   : > { %p948_p3 = scmp.lt.s32.totalorder %s1152_s21, 2  ;;  %s212_s26 = sand.u32 1, %s1152_s21  }
   0xa   : > { %s1217_s25 = scalar_select %p74_p1, %s1148_s20, %s76_s23  }
   0xb   : > { %p85_p4 = por %p84_p2, %p83_p0  ;;  %s214_s27 = sand.u32 1, %s1148_s20  }
   0xc   : > { %s1223_s28 = sshll.u32 %s214_s27, 1  ;;  %s1226_s29 = sshll.u32 %s1152_s21, 1 }
   0xd   : > { %s220_s7 = scalar_lea.hbm %s1420_s2, %s1226_s29  ;;  %s216_s9 = scalar_lea.vmem [#allocation4], %s1223_s28 }
   0xe   : > { %s222_s8 = sshll.u32 %s220_s7, 4  ;;  %s224_s10 = sshll.u32 %s216_s9, 4  ;;  %s223_s8 = int_to_ptr.hbm [resolvable:$true] %s222_s8  ;;  %s225_s10 = int_to_ptr.vmem [resolvable:$true] %s224_s10 }
   0xf   : > { %p1235_p5 = pnand %p948_p3, %p85_p4  ;;  %s1240_s12 = sadd.s32 4294967295, %s1152_s21  }
  0x10   : > { %p89_p6 = scmp.ne.s32.totalorder %s1144_s19, %s1140_s18  ;;  %s1244_s13 = scalar_lea.sflag [#allocation5], %s212_s26 }
  0x11   : > { %s990_s14 = sshra.s32 %s223_s8, 4  ;;  %p994_p8 = pneg %p1235_p5  ;;  %s991_s14 = int_to_ptr.hbm [resolvable:$true] %s990_s14 }
  0x12   : > { %s992_s15 = scalar_lea.hbm %s991_s14, 2  ;;  %s997_s23 = scalar_lea.hbm %s1420_s2, 4 }
  0x13   : > { %p993_p7 = scmp.ne.s32.totalorder %s991_s14, %s992_s15  ;;  %p998_p11 = scmp.lt.s32.totalorder %s991_s14, %s1420_s2 }
  0x14   : > { %p999_p12 = scmp.lt.s32.totalorder %s997_s23, %s992_s15 }
  0x15   : > { %p995_p9 = pnand %p994_p8, %p993_p7 }
  0x16   : > { %p1000_p13 = por %p999_p12, %p998_p11 }
  0x17   : > { %p996_p10 = pneg %p995_p9 }
  0x19   : > { %p1001_p0 = pnand %p1000_p13, %p996_p10 }
  0x1b   : > { %1004 = shalt.err (!%p1001_p0)
}
  0x1c   : > { %940 = dma.hbm_to_vmem [thread:$0]  (!%p1235_p5), %s223_s8, 32, %s225_s10, %s1244_s13  }
  0x1d   : > { %p90_p1 = scmp.eq.s32.totalorder %s1240_s12, 0  ;;  %p790_p2 = scmp.ge.s32.totalorder %s1152_s21, 1 }
  0x1e   : > { %p178_p3 = scmp.lt.s32.totalorder %s1152_s21, 3  ;;  %s190_s9 = sshll.u32 %s1418_s0, 4  ;;  %s191_s9 = int_to_ptr.hbm [resolvable:$true] %s190_s9 }
  0x1f   : > { %p1268_p4 = por %p90_p1, %p89_p6  ;;  %s1154_s21 = smov [#allocation2]  }
  0x20   : > { %p1275_p7 = pnand %p790_p2, %p178_p3  ;;  %s192_s18 = sshll.u32 %s1154_s21, 4  ;;  %s193_s18 = int_to_ptr.vmem [resolvable:$true] %s192_s18 }
  0x21   : > { %s239_s15 = scalar_lea.hbm %s1421_s3, %s1226_s29  ;;  %s235_s17 = scalar_lea.vmem [#allocation6], %s1223_s28 }
  0x22   : > { %p933_p9 = pneg %p1275_p7  ;;  %s241_s16 = sshll.u32 %s239_s15, 4  ;;  %s242_s16 = int_to_ptr.hbm [resolvable:$true] %s241_s16 }
  0x23   : > { %s243_s23 = sshll.u32 %s235_s17, 4  ;;  %s1050_s24 = sshra.s32 %s242_s16, 4  ;;  %s244_s23 = int_to_ptr.vmem [resolvable:$true] %s243_s23  ;;  %s1051_s24 = int_to_ptr.hbm [resolvable:$true] %s1050_s24 }
  0x24   : > { %p934_p6 = pnand %p933_p9, %p90_p1  ;;  %s1052_s30 = scalar_lea.hbm %s1051_s24, 2 }
  0x25   : > { %p1053_p10 = scmp.ne.s32.totalorder %s1051_s24, %s1052_s30  ;;  %s1057_s21 = scalar_lea.hbm %s1421_s3, 4 }
  0x26   : > { %936 = dma.hbm_to_vmem [thread:$0]  (!%p934_p6), %s191_s9, 128, %s193_s18, [#allocation3]  }
  0x27   : > { %p1055_p11 = pnand %p1053_p10, %p994_p8  ;;  %p1058_p13 = scmp.lt.s32.totalorder %s1051_s24, %s1421_s3 }
  0x28   : > { %p1059_p0 = scmp.lt.s32.totalorder %s1057_s21, %s1052_s30 }
  0x29   : > { %p1056_p12 = pneg %p1055_p11 }
  0x2a   : > { %p1060_p2 = por %p1059_p0, %p1058_p13 }
  0x2c   : > { %p1061_p3 = pnand %p1060_p2, %p1056_p12 }
  0x2e   : > { %1064 = shalt.err (!%p1061_p3)
}
  0x2f   : > { %943 = dma.hbm_to_vmem [thread:$0]  (!%p1235_p5), %s242_s16, 32, %s244_s23, %s1244_s13  }
  0x30   : > { %s258_s15 = scalar_lea.hbm %s1422_s4, %s1226_s29  ;;  %s254_s17 = scalar_lea.vmem [#allocation7], %s1223_s28 }
  0x31   : > { %s262_s6 = sshll.u32 %s254_s17, 4  ;;  %s260_s7 = sshll.u32 %s258_s15, 4  ;;  %s263_s6 = int_to_ptr.vmem [resolvable:$true] %s262_s6  ;;  %s261_s7 = int_to_ptr.hbm [resolvable:$true] %s260_s7 }
  0x32   : > { %s251_s24 = scalar_lea.sflag [#allocation8], %s214_s27  ;;  %s1080_s30 = sshra.s32 %s261_s7, 4  ;;  %s1081_s30 = int_to_ptr.hbm [resolvable:$true] %s1080_s30 }
  0x33   : > { %s1082_s21 = scalar_lea.hbm %s1081_s30, 2  ;;  %s1087_s23 = scalar_lea.hbm %s1422_s4, 4 }
  0x34   : > { %p1083_p9 = scmp.ne.s32.totalorder %s1081_s30, %s1082_s21  ;;  %p1088_p11 = scmp.lt.s32.totalorder %s1081_s30, %s1422_s4 }
  0x35   : > { %p1089_p12 = scmp.lt.s32.totalorder %s1087_s23, %s1082_s21 }
  0x36   : > { %p1085_p6 = pnand %p1083_p9, %p994_p8 }
  0x37   : > { %p1090_p13 = por %p1089_p12, %p1088_p11 }
  0x38   : > { %p1086_p10 = pneg %p1085_p6 }
  0x3a   : > { %p1091_p0 = pnand %p1090_p13, %p1086_p10 }
  0x3c   : > { %1094 = shalt.err (!%p1091_p0)
}
  0x3d   : > { %946 = dma.hbm_to_vmem [thread:$0]  (!%p1235_p5), %s261_s7, 32, %s263_s6, %s251_s24  }
  0x3e   : > { %271 = sbr.rel (%p1275_p7) target bundleno = 337 (0x151), region = 40 }
  0x43   : > { %1127 = dma.done.wait (%p90_p1), [#allocation3], 128  }
  0x44   : > { %1129 = vsyncadd (%p90_p1), [#allocation3], 4294967168  ;;  %s278_s27 = sand.u32 1, %s1240_s12   ;;  %s280_s8 = sand.u32 1, %s1144_s19  }
  0x45   : > { %s1326_s10 = sshll.u32 %s280_s8, 1  ;;  %s279_s9 = scalar_lea.sflag [#allocation5], %s278_s27 }
  0x46   : > { %s282_s11 = scalar_lea.vmem [#allocation4], %s1326_s10 }
  0x47   : > { %1131 = dma.done.wait (%p1268_p4), %s279_s9, 64  }
  0x48   : > { %1133 = vsyncadd (%p1268_p4), %s279_s9, 4294967232  ;;  %s292_s14 = scalar_lea.vmem [#allocation6], %s1326_s10  ;;  %s299_s18 = scalar_lea.sflag [#allocation8], %s280_s8 }
  0x49   : > { %s302_s15 = scalar_lea.vmem [#allocation7], %s1326_s10 }
  0x4a   : > { %1135 = dma.done.wait (%p1268_p4), %s299_s18, 32  }
  0x4b   : > { %1137 = vsyncadd (%p1268_p4), %s299_s18, 4294967264  ;;  %s804_s17 = sshll.u32 %s1240_s12, 5  ;;  %vm431_vm0 = vcmask 261120   ;;  %v360_v48 = vld [vmem:[#allocation2] sm:$0xff]  ;;  %v1155_v49 = vmov 8.0   ;;  %s806_s26 = sshll.u32 %s1240_s12, 1 }
  0x4c   : > { %p346_p5 = scmp.lt.s32.totalorder %s804_s17, 63  ;;  %984 = vrcp.f32 %v1155_v49  ;;  %v425_v51 = vld [vmem:[%s282_s11] sm:$0x3]  ;;  %p355_p8 = scmp.lt.s32.totalorder %s806_s26, 3 }
  0x4d   : > { %v427_v53 = vperm.slane %v425_v51, 0  ;;  %v428_v54 = vperm.slane %v425_v51, 1 }
  0x4e   : > { %s1432_s17 = smov (!%p346_p5, %s804_s17), 63  ;;  %s1434_s26 = smov (!%p355_p8, %s806_s26), 3 }
  0x4f   : > { %s805_s6 = sshll.u32 %s1432_s17, 2  ;;  %s807_s12 = sshll.u32 %s1434_s26, 3 }
  0x50   : > { %s1343_s30 = scalar_lea.vmem %s1419_s1, %s805_s6  ;;  %s358_s16 = scalar_lea.vmem %s1423_s5, %s807_s12 }
  0x51   : > { %v914_v0 = vld [vmem:[%s1343_s30 + $0x38] sm:$0xff]   ;;  %v913_v6 = vld [vmem:[%s1343_s30 + $0x30] sm:$0xff]   ;;  %v912_v12 = vld [vmem:[%s1343_s30 + $0x28] sm:$0xff]  }
  0x52   : > { %v922_v1 = vld [vmem:[%s1343_s30 + $0x78] sm:$0xff]   ;;  %v875_v2 = vunpack.c.h.bf16 %v914_v0  ;;  %v874_v4 = vunpack.c.l.bf16 %v914_v0  ;;  %v921_v7 = vld [vmem:[%s1343_s30 + $0x70] sm:$0xff]   ;;  %v871_v8 = vunpack.c.h.bf16 %v913_v6  ;;  %v870_v10 = vunpack.c.l.bf16 %v913_v6  ;;  %v920_v13 = vld [vmem:[%s1343_s30 + $0x68] sm:$0xff]   ;;  %v985_v50 = vpop.eup %984 }
  0x53   : > { %v907_v3 = vunpack.c.h.bf16 %v922_v1  ;;  %v906_v5 = vunpack.c.l.bf16 %v922_v1  ;;  %v903_v9 = vunpack.c.h.bf16 %v921_v7  ;;  %v902_v11 = vunpack.c.l.bf16 %v921_v7  ;;  %v911_v18 = vld [vmem:[%s1343_s30 + $0x20] sm:$0xff]   ;;  %v910_v24 = vld [vmem:[%s1343_s30 + $0x18] sm:$0xff]   ;;  %v909_v30 = vld [vmem:[%s1343_s30 + $0x10] sm:$0xff]  }
  0x54   : > { %808 = vmatpush.xpose.msk.msra.mxu0 %vm431_vm0, %v875_v2  ;;  %v867_v14 = vunpack.c.h.bf16 %v912_v12  ;;  %v899_v15 = vunpack.c.h.bf16 %v920_v13  ;;  %v866_v16 = vunpack.c.l.bf16 %v912_v12  ;;  %v898_v17 = vunpack.c.l.bf16 %v920_v13  ;;  %v919_v19 = vld [vmem:[%s1343_s30 + $0x60] sm:$0xff]   ;;  %v918_v25 = vld [vmem:[%s1343_s30 + $0x58] sm:$0xff]   ;;  %v917_v31 = vld [vmem:[%s1343_s30 + $0x50] sm:$0xff]  }
  0x55   : > { %825 = vmatpush.xpose.msk.msra.mxu1 %vm431_vm0, %v907_v3  ;;  %v863_v20 = vunpack.c.h.bf16 %v911_v18  ;;  %v895_v21 = vunpack.c.h.bf16 %v919_v19  ;;  %v862_v22 = vunpack.c.l.bf16 %v911_v18  ;;  %v894_v23 = vunpack.c.l.bf16 %v919_v19  ;;  %v908_v36 = vld [vmem:[%s1343_s30 + $0x8] sm:$0xff]   ;;  %v845_v42 = vld [vmem:[%s1343_s30] sm:$0xff]  }
  0x56   : > { %v859_v26 = vunpack.c.h.bf16 %v910_v24  ;;  %v891_v27 = vunpack.c.h.bf16 %v918_v25  ;;  %v858_v28 = vunpack.c.l.bf16 %v910_v24  ;;  %v890_v29 = vunpack.c.l.bf16 %v918_v25  ;;  %v916_v37 = vld [vmem:[%s1343_s30 + $0x48] sm:$0xff]   ;;  %v915_v43 = vld [vmem:[%s1343_s30 + $0x40] sm:$0xff]  }
  0x57   : > { %v855_v32 = vunpack.c.h.bf16 %v909_v30  ;;  %v887_v33 = vunpack.c.h.bf16 %v917_v31  ;;  %v854_v34 = vunpack.c.l.bf16 %v909_v30  ;;  %v886_v35 = vunpack.c.l.bf16 %v917_v31 }
  0x58   : > { %809 = vmatpush.xpose.msk.msra.mxu0 %vm431_vm0, %v874_v4  ;;  %v851_v38 = vunpack.c.h.bf16 %v908_v36  ;;  %v883_v39 = vunpack.c.h.bf16 %v916_v37  ;;  %v850_v40 = vunpack.c.l.bf16 %v908_v36  ;;  %v882_v41 = vunpack.c.l.bf16 %v916_v37 }
  0x59   : > { %826 = vmatpush.xpose.msk.msra.mxu1 %vm431_vm0, %v906_v5  ;;  %v847_v44 = vunpack.c.h.bf16 %v845_v42  ;;  %v879_v45 = vunpack.c.h.bf16 %v915_v43  ;;  %v846_v46 = vunpack.c.l.bf16 %v845_v42  ;;  %v878_v47 = vunpack.c.l.bf16 %v915_v43  ;;  %v634_v42 = vld [vmem:[%s292_s14] sm:$0x3] }
  0x5a   : > { %v584_v52 = vmul.f32 8.0, %v985_v50  ;;  %vm588_vm1 = vweird.f32 %v985_v50  ;;  %v637_v49 = vperm.slane %v634_v42, 1 }
  0x5c   : > { %810 = vmatpush.xpose.msk.msra.mxu0 %vm431_vm0, %v871_v8  ;;  %v585_v56 = vsub.f32 1.0, %v584_v52 }
  0x5d   : > { %827 = vmatpush.xpose.msk.msra.mxu1 %vm431_vm0, %v903_v9 }
  0x5e   : > { %v586_v62 = vmul.f32 %v985_v50, %v585_v56 }
  0x60   : > { %811 = vmatpush.xpose.msk.msra.mxu0 %vm431_vm0, %v870_v10  ;;  %v587_v3 = vadd.f32 %v985_v50, %v586_v62 }
  0x61   : > { %828 = vmatpush.xpose.msk.msra.mxu1 %vm431_vm0, %v902_v11 }
  0x62   : > { %v589_v8 = vsel %vm588_vm1, %v985_v50, %v587_v3 }
  0x64   : > { %812 = vmatpush.xpose.msk.msra.mxu0 %vm431_vm0, %v867_v14 }
  0x65   : > { %829 = vmatpush.xpose.msk.msra.mxu1 %vm431_vm0, %v899_v15 }
  0x68   : > { %813 = vmatpush.xpose.msk.msra.mxu0 %vm431_vm0, %v866_v16 }
  0x69   : > { %830 = vmatpush.xpose.msk.msra.mxu1 %vm431_vm0, %v898_v17 }
  0x6c   : > { %814 = vmatpush.xpose.msk.msra.mxu0 %vm431_vm0, %v863_v20 }
  0x6d   : > { %831 = vmatpush.xpose.msk.msra.mxu1 %vm431_vm0, %v895_v21 }
  0x70   : > { %815 = vmatpush.xpose.msk.msra.mxu0 %vm431_vm0, %v862_v22 }
  0x71   : > { %832 = vmatpush.xpose.msk.msra.mxu1 %vm431_vm0, %v894_v23 }
  0x74   : > { %816 = vmatpush.xpose.msk.msra.mxu0 %vm431_vm0, %v859_v26 }
  0x75   : > { %833 = vmatpush.xpose.msk.msra.mxu1 %vm431_vm0, %v891_v27 }
  0x78   : > { %817 = vmatpush.xpose.msk.msra.mxu0 %vm431_vm0, %v858_v28 }
  0x79   : > { %834 = vmatpush.xpose.msk.msra.mxu1 %vm431_vm0, %v890_v29 }
  0x7c   : > { %818 = vmatpush.xpose.msk.msra.mxu0 %vm431_vm0, %v855_v32 }
  0x7d   : > { %835 = vmatpush.xpose.msk.msra.mxu1 %vm431_vm0, %v887_v33 }
  0x80   : > { %819 = vmatpush.xpose.msk.msra.mxu0 %vm431_vm0, %v854_v34 }
  0x81   : > { %836 = vmatpush.xpose.msk.msra.mxu1 %vm431_vm0, %v886_v35 }
  0x84   : > { %820 = vmatpush.xpose.msk.msra.mxu0 %vm431_vm0, %v851_v38 }
  0x85   : > { %837 = vmatpush.xpose.msk.msra.mxu1 %vm431_vm0, %v883_v39 }
  0x88   : > { %821 = vmatpush.xpose.msk.msra.mxu0 %vm431_vm0, %v850_v40 }
  0x89   : > { %838 = vmatpush.xpose.msk.msra.mxu1 %vm431_vm0, %v882_v41 }
  0x8c   : > { %822 = vmatpush.xpose.msk.msra.mxu0 %vm431_vm0, %v847_v44 }
  0x8d   : > { %839 = vmatpush.xpose.msk.msra.mxu1 %vm431_vm0, %v879_v45  ;;  %v642_v45 = vld [vmem:[%s302_s15] sm:$0x3] }
  0x8e   : > { %v644_v51 = vperm.slane %v642_v45, 0 }
  0x90   : > { %823 = vmatpush.xpose.msk.msra.mxu0 %vm431_vm0, %v846_v46  ;;  %v636_v46 = vperm.slane %v634_v42, 0 }
  0x91   : > { %840 = vmatpush.xpose.msk.msra.mxu1 %vm431_vm0, %v878_v47 }
  0x93   : > { %824 = vmatmul.msk.f32.vlgmr.msra.gmra.mxu0 %vm431_vm0, %v360_v48 }
  0x94   : > { %841 = vmatmul.msk.f32.vlgmr.msra.gmra.mxu1 %vm431_vm0, %v360_v48 }
 0x110   : > { %v548_v55 = vpop.f32.mrf.mxu0 }
 0x111   : > { %v568_v57 = vpop.f32.mrf.mxu1  ;;  %v549_v58 = vadd.f32 %v548_v55, %v427_v53 }
 0x112   : > { %v569_v59 = vadd.f32 %v568_v57, %v428_v54  ;;  %v645_v54 = vperm.slane %v642_v45, 1 }
 0x113   : > { %v571_v60 = vrot.slane %v549_v58, 4 }
 0x114   : > { %v577_v61 = vrot.slane %v569_v59, 4 }
 0x115   : > { %v572_v63 = vadd.f32 %v571_v60, %v549_v58 }
 0x116   : > { %v578_v0 = vadd.f32 %v577_v61, %v569_v59 }
 0x117   : > { %v573_v1 = vrot.slane %v572_v63, 2 }
 0x118   : > { %v579_v2 = vrot.slane %v578_v0, 2 }
 0x119   : > { %v574_v4 = vadd.f32 %v573_v1, %v572_v63 }
 0x11a   : > { %v580_v5 = vadd.f32 %v579_v2, %v578_v0 }
 0x11b   : > { %v575_v6 = vrot.slane %v574_v4, 1 }
 0x11c   : > { %v581_v7 = vrot.slane %v580_v5, 1 }
 0x11d   : > { %v576_v9 = vadd.f32 %v575_v6, %v574_v4 }
 0x11e   : > { %v582_v10 = vadd.f32 %v581_v7, %v580_v5 }
 0x11f   : > { %v590_v11 = vmul.f32 %v589_v8, %v576_v9 }
 0x120   : > { %v591_v12 = vmul.f32 %v589_v8, %v582_v10 }
 0x121   : > { %v592_v13 = vsub.f32 %v549_v58, %v590_v11 }
 0x122   : > { %v593_v14 = vsub.f32 %v569_v59, %v591_v12 }
 0x123   : > { %v594_v15 = vmul.f32 %v592_v13, %v592_v13 }
 0x124   : > { %v595_v16 = vmul.f32 %v593_v14, %v593_v14 }
 0x125   : > { %v596_v17 = vrot.slane %v594_v15, 4 }
 0x126   : > { %v602_v18 = vrot.slane %v595_v16, 4 }
 0x127   : > { %v597_v19 = vadd.f32 %v596_v17, %v594_v15 }
 0x128   : > { %v603_v20 = vadd.f32 %v602_v18, %v595_v16 }
 0x129   : > { %v598_v21 = vrot.slane %v597_v19, 2 }
 0x12a   : > { %v604_v22 = vrot.slane %v603_v20, 2 }
 0x12b   : > { %v599_v23 = vadd.f32 %v598_v21, %v597_v19 }
 0x12c   : > { %v605_v24 = vadd.f32 %v604_v22, %v603_v20 }
 0x12d   : > { %v600_v25 = vrot.slane %v599_v23, 1 }
 0x12e   : > { %v606_v26 = vrot.slane %v605_v24, 1 }
 0x12f   : > { %v601_v27 = vadd.f32 %v600_v25, %v599_v23 }
 0x130   : > { %v607_v28 = vadd.f32 %v606_v26, %v605_v24 }
 0x131   : > { %v608_v29 = vmul.f32 %v601_v27, %v589_v8 }
 0x132   : > { %v609_v30 = vmul.f32 %v607_v28, %v589_v8 }
 0x133   : > { %v610_v31 = vadd.f32 0.0001, %v608_v29 }
 0x134   : > { %v611_v32 = vadd.f32 0.0001, %v609_v30 }
 0x135   : > { %986 = vrsqrt.f32 %v610_v31  ;;  %vm618_vm4 = vweird.f32 %v610_v31 }
 0x136   : > { %988 = vrsqrt.f32 %v611_v32  ;;  %vm628_vm6 = vweird.f32 %v611_v32 }
 0x13b   : > { %v987_v33 = vpop.eup %986 }
 0x13c   : > { %v989_v34 = vpop.eup %988  ;;  %v613_v35 = vmul.f32 %v987_v33, %v610_v31  ;;  %vm619_vm2 = vweird.f32 %v987_v33 }
 0x13d   : > { %v623_v36 = vmul.f32 %v989_v34, %v611_v32  ;;  %vm629_vm3 = vweird.f32 %v989_v34  ;;  %vm620_vm5 = vmor %vm618_vm4, %vm619_vm2 }
 0x13e   : > { %v614_v37 = vmul.f32 %v987_v33, %v613_v35  ;;  %vm630_vm7 = vmor %vm628_vm6, %vm629_vm3 }
 0x13f   : > { %v624_v38 = vmul.f32 %v989_v34, %v623_v36 }
 0x140   : > { %v615_v39 = vmul.f32 0.5, %v614_v37 }
 0x141   : > { %v625_v40 = vmul.f32 0.5, %v624_v38 }
 0x142   : > { %v616_v41 = vsub.f32 1.5, %v615_v39 }
 0x143   : > { %v626_v43 = vsub.f32 1.5, %v625_v40 }
 0x144   : > { %v617_v44 = vmul.f32 %v987_v33, %v616_v41 }
 0x145   : > { %v627_v47 = vmul.f32 %v989_v34, %v626_v43 }
 0x146   : > { %v621_v48 = vsel %vm620_vm5, %v987_v33, %v617_v44 }
 0x147   : > { %v632_v50 = vmul.f32 %v621_v48, %v592_v13  ;;  %v631_v52 = vsel %vm630_vm7, %v989_v34, %v627_v47 }
 0x148   : > { %v633_v53 = vmul.f32 %v631_v52, %v593_v14 }
 0x149   : > { %v640_v55 = vmul.f32 %v636_v46, %v632_v50 }
 0x14a   : > { %v641_v56 = vmul.f32 %v637_v49, %v633_v53 }
 0x14b   : > { %v648_v57 = vadd.f32 %v644_v51, %v640_v55 }
 0x14c   : > { %v649_v58 = vadd.f32 %v645_v54, %v641_v56 }
 0x14d   : > { %v650_v59 = vmax.f32 %v648_v57, 0.0 }
 0x14e   : > { %v651_v60 = vmax.f32 %v649_v58, 0.0 }
 0x14f   : > { %652 = vst [vmem:[%s358_s16] sm:$0xff] %v650_v59 }
 0x150   : > { %653 = vst [vmem:[%s358_s16 + $0x8] sm:$0xff] %v651_v60 }
 0x151 PF: > { %p19_p1 = scmp.ge.s32.totalorder %s1207_s22, 4   ;;  %s1427_s18 = smov %s1144_s19 }
 0x152   : > { %s1428_s19 = smov %s1148_s20  ;;  %s1429_s20 = smov %s1217_s25 }
 0x153   : > { %s1430_s21 = smov %s1207_s22  ;;  %21 = sbr.rel (!%p19_p1) target bundleno = 6 (0x6), region = 112 }
 0x158   :  { %676 = vsyncpa [#allocation3], 1 }
 0x159   :  { %678 = vsyncpa [#allocation3 + $0x1], 1 }
 0x15a   :  { %679 = vsyncpa [#allocation5], 1 }
 0x15b   :  { %681 = vsyncpa [#allocation5 + $0x1], 1 }
 0x15c   :  { %682 = vsyncpa [#allocation8], 1 }
 0x15d   :  { %684 = vsyncpa [#allocation8 + $0x1], 1 }

// kernel: binaryconnect_forward.6
= control target key start
LH: loop header
LB: loop body
LE: loop exit
PB: predicated region body
PF: predicated region fallthrough
CT: control target
= control target key end

     0   :  { %s886_s18 = smov 0   ;;  %s1020_s0 = inlined_call_operand.vmem [shape: f32[8,512], index: 0, kind: input, shape index: {}]   ;;  %s1021_s1 = inlined_call_operand.vmem [shape: bf16[512,512], index: 1, kind: input, shape index: {}]   ;;  %s1022_s2 = inlined_call_operand.vmem [shape: f32[1,512], index: 2, kind: input, shape index: {}]   ;;  %s1023_s3 = inlined_call_operand.vmem [shape: f32[1,512], index: 3, kind: input, shape index: {}]   ;;  %s1024_s4 = inlined_call_operand.vmem [shape: f32[1,512], index: 4, kind: input, shape index: {}]   ;;  %s1025_s5 = inlined_call_operand.vmem [shape: f32[8,512], index: 5, kind: output, shape index: {}]  }
   0x1 LB: > { %s816_s19 = sadd.s32 4294967295, %s853_s18   ;;  %p820_p0 = scmp.ge.s32.totalorder %s853_s18, 1  ;;  %s853_s18 = sphi %s886_s18, %s15_s18  }
   0x2   : > { %p219_p1 = scmp.lt.s32.totalorder %s853_s18, 3 }
   0x4   : > { %p220_p2 = pnand %p820_p0, %p219_p1 }
   0x5   : > { %s821_s20 = sshll.u32 (!%p220_p2), %s816_s19, 5  ;;  %s824_s8 = sshll.u32 (!%p220_p2), %s816_s19, 1 }
   0x6   : > { %223 = sbr.rel (%p220_p2) target bundleno = 341 (0x155), region = 40  ;;  %p261_p3 = scmp.lt.s32.totalorder (!%p220_p2), %s821_s20, 63 }
   0x7   : > { %p268_p4 = scmp.lt.s32.totalorder (!%p220_p2), %s824_s8, 3 }
   0xb   : > { %s1027_s20 = smov (!%p261_p3, %s821_s20), 63  ;;  %s1029_s8 = smov (!%p268_p4, %s824_s8), 3 }
   0xc   : > { %s831_s21 = sshll.u32 %s1027_s20, 4  ;;  %s270_s11 = scalar_lea.vmem %s1022_s2, %s1029_s8 }
   0xd   : > { %s899_s24 = scalar_lea.vmem %s1021_s1, %s831_s21  ;;  %s275_s14 = scalar_lea.vmem %s1023_s3, %s1029_s8 }
   0xe   : > { %v323_v0 = vld [vmem:[%s899_s24 + $0xf8] sm:$0xff]  ;;  %v322_v1 = vld [vmem:[%s899_s24 + $0xf0] sm:$0xff]  ;;  %v321_v2 = vld [vmem:[%s899_s24 + $0xe8] sm:$0xff]  ;;  %s280_s17 = scalar_lea.vmem %s1024_s4, %s1029_s8  ;;  %s828_s19 = sshll.u32 %s1029_s8, 3 }
   0xf   : > { %v418_v3 = vunpack.c.l.bf16 %v323_v0  ;;  %v416_v4 = vunpack.c.l.bf16 %v322_v1  ;;  %v419_v5 = vunpack.c.h.bf16 %v323_v0  ;;  %v417_v6 = vunpack.c.h.bf16 %v322_v1  ;;  %v320_v7 = vld [vmem:[%s899_s24 + $0xe0] sm:$0xff]  ;;  %v319_v12 = vld [vmem:[%s899_s24 + $0xd8] sm:$0xff]  ;;  %v318_v13 = vld [vmem:[%s899_s24 + $0xd0] sm:$0xff]  ;;  %s1013_s22 = scalar_lea.vmem %s1025_s5, %s828_s19 }
  0x10   : > { %v414_v8 = vunpack.c.l.bf16 %v321_v2  ;;  %v412_v9 = vunpack.c.l.bf16 %v320_v7  ;;  %v415_v10 = vunpack.c.h.bf16 %v321_v2  ;;  %v413_v11 = vunpack.c.h.bf16 %v320_v7  ;;  %v317_v18 = vld [vmem:[%s899_s24 + $0xc8] sm:$0xff]  ;;  %v316_v19 = vld [vmem:[%s899_s24 + $0xc0] sm:$0xff]  ;;  %v315_v24 = vld [vmem:[%s899_s24 + $0xb8] sm:$0xff] }
  0x11   : > { %530 = vmatpush.xpose.msra.mxu2 %v418_v3  ;;  %490 = vmatpush.xpose.msra.mxu0 %v416_v4  ;;  %v410_v14 = vunpack.c.l.bf16 %v319_v12  ;;  %v408_v15 = vunpack.c.l.bf16 %v318_v13  ;;  %v411_v16 = vunpack.c.h.bf16 %v319_v12  ;;  %v409_v17 = vunpack.c.h.bf16 %v318_v13  ;;  %v314_v25 = vld [vmem:[%s899_s24 + $0xb0] sm:$0xff]  ;;  %v313_v30 = vld [vmem:[%s899_s24 + $0xa8] sm:$0xff]  ;;  %v312_v31 = vld [vmem:[%s899_s24 + $0xa0] sm:$0xff] }
  0x12   : > { %550 = vmatpush.xpose.msra.mxu3 %v419_v5  ;;  %510 = vmatpush.xpose.msra.mxu1 %v417_v6  ;;  %v406_v20 = vunpack.c.l.bf16 %v317_v18  ;;  %v404_v21 = vunpack.c.l.bf16 %v316_v19  ;;  %v407_v22 = vunpack.c.h.bf16 %v317_v18  ;;  %v405_v23 = vunpack.c.h.bf16 %v316_v19  ;;  %v311_v36 = vld [vmem:[%s899_s24 + $0x98] sm:$0xff]  ;;  %v310_v37 = vld [vmem:[%s899_s24 + $0x90] sm:$0xff]  ;;  %v309_v42 = vld [vmem:[%s899_s24 + $0x88] sm:$0xff] }
  0x13   : > { %v402_v26 = vunpack.c.l.bf16 %v315_v24  ;;  %v400_v27 = vunpack.c.l.bf16 %v314_v25  ;;  %v403_v28 = vunpack.c.h.bf16 %v315_v24  ;;  %v401_v29 = vunpack.c.h.bf16 %v314_v25  ;;  %v308_v43 = vld [vmem:[%s899_s24 + $0x80] sm:$0xff]  ;;  %v307_v48 = vld [vmem:[%s899_s24 + $0x78] sm:$0xff]  ;;  %v306_v49 = vld [vmem:[%s899_s24 + $0x70] sm:$0xff] }
  0x14   : > { %v398_v32 = vunpack.c.l.bf16 %v313_v30  ;;  %v396_v33 = vunpack.c.l.bf16 %v312_v31  ;;  %v399_v34 = vunpack.c.h.bf16 %v313_v30  ;;  %v397_v35 = vunpack.c.h.bf16 %v312_v31  ;;  %v305_v54 = vld [vmem:[%s899_s24 + $0x68] sm:$0xff]  ;;  %v304_v55 = vld [vmem:[%s899_s24 + $0x60] sm:$0xff]  ;;  %v303_v60 = vld [vmem:[%s899_s24 + $0x58] sm:$0xff] }
  0x15   : > { %531 = vmatpush.xpose.msra.mxu2 %v414_v8  ;;  %491 = vmatpush.xpose.msra.mxu0 %v412_v9  ;;  %v394_v38 = vunpack.c.l.bf16 %v311_v36  ;;  %v392_v39 = vunpack.c.l.bf16 %v310_v37  ;;  %v395_v40 = vunpack.c.h.bf16 %v311_v36  ;;  %v393_v41 = vunpack.c.h.bf16 %v310_v37  ;;  %v302_v61 = vld [vmem:[%s899_s24 + $0x50] sm:$0xff]  ;;  %v301_v2 = vld [vmem:[%s899_s24 + $0x48] sm:$0xff]  ;;  %v300_v3 = vld [vmem:[%s899_s24 + $0x40] sm:$0xff] }
  0x16   : > { %551 = vmatpush.xpose.msra.mxu3 %v415_v10  ;;  %511 = vmatpush.xpose.msra.mxu1 %v413_v11  ;;  %v390_v44 = vunpack.c.l.bf16 %v309_v42  ;;  %v388_v45 = vunpack.c.l.bf16 %v308_v43  ;;  %v391_v46 = vunpack.c.h.bf16 %v309_v42  ;;  %v389_v47 = vunpack.c.h.bf16 %v308_v43  ;;  %v299_v8 = vld [vmem:[%s899_s24 + $0x38] sm:$0xff]  ;;  %v298_v9 = vld [vmem:[%s899_s24 + $0x30] sm:$0xff]  ;;  %v353_v36 = vld [vmem:[%s899_s24 + $0x1e8] sm:$0xff] }
  0x17   : > { %v386_v50 = vunpack.c.l.bf16 %v307_v48  ;;  %v384_v51 = vunpack.c.l.bf16 %v306_v49  ;;  %v387_v52 = vunpack.c.h.bf16 %v307_v48  ;;  %v385_v53 = vunpack.c.h.bf16 %v306_v49  ;;  %v945_v42 = vld [vmem:[%s1020_s0] sm:$0xff]  ;;  %v959_v49 = vld [vmem:[%s1020_s0 + $0x8] sm:$0xff] }
  0x18   : > { %v382_v56 = vunpack.c.l.bf16 %v305_v54  ;;  %v380_v57 = vunpack.c.l.bf16 %v304_v55  ;;  %v383_v58 = vunpack.c.h.bf16 %v305_v54  ;;  %v381_v59 = vunpack.c.h.bf16 %v304_v55  ;;  %v348_v54 = vld [vmem:[%s899_s24 + $0x1c0] sm:$0xff] }
  0x19   : > { %532 = vmatpush.xpose.msra.mxu2 %v410_v14  ;;  %492 = vmatpush.xpose.msra.mxu0 %v408_v15  ;;  %v378_v62 = vunpack.c.l.bf16 %v303_v60  ;;  %v376_v63 = vunpack.c.l.bf16 %v302_v61  ;;  %v379_v0 = vunpack.c.h.bf16 %v303_v60  ;;  %v377_v1 = vunpack.c.h.bf16 %v302_v61  ;;  %v297_v14 = vld [vmem:[%s899_s24 + $0x28] sm:$0xff]  ;;  %v296_v15 = vld [vmem:[%s899_s24 + $0x20] sm:$0xff]  ;;  %v346_v60 = vld [vmem:[%s899_s24 + $0x1b0] sm:$0xff] }
  0x1a   : > { %552 = vmatpush.xpose.msra.mxu3 %v411_v16  ;;  %512 = vmatpush.xpose.msra.mxu1 %v409_v17  ;;  %v374_v4 = vunpack.c.l.bf16 %v301_v2  ;;  %v372_v5 = vunpack.c.l.bf16 %v300_v3  ;;  %v375_v6 = vunpack.c.h.bf16 %v301_v2  ;;  %v373_v7 = vunpack.c.h.bf16 %v300_v3  ;;  %v344_v2 = vld [vmem:[%s899_s24 + $0x1a0] sm:$0xff] }
  0x1b   : > { %v370_v10 = vunpack.c.l.bf16 %v299_v8  ;;  %v368_v11 = vunpack.c.l.bf16 %v298_v9  ;;  %v371_v12 = vunpack.c.h.bf16 %v299_v8  ;;  %v369_v13 = vunpack.c.h.bf16 %v298_v9  ;;  %v342_v8 = vld [vmem:[%s899_s24 + $0x190] sm:$0xff] }
  0x1c   : > { %v366_v16 = vunpack.c.l.bf16 %v297_v14  ;;  %v364_v17 = vunpack.c.l.bf16 %v296_v15  ;;  %v367_v18 = vunpack.c.h.bf16 %v297_v14  ;;  %v365_v19 = vunpack.c.h.bf16 %v296_v15  ;;  %v340_v14 = vld [vmem:[%s899_s24 + $0x180] sm:$0xff] }
  0x1d   : > { %533 = vmatpush.xpose.msra.mxu2 %v406_v20  ;;  %493 = vmatpush.xpose.msra.mxu0 %v404_v21  ;;  %v295_v20 = vld [vmem:[%s899_s24 + $0x18] sm:$0xff]  ;;  %v294_v21 = vld [vmem:[%s899_s24 + $0x10] sm:$0xff]  ;;  %v469_v61 = vunpack.c.h.bf16 %v348_v54  ;;  %v465_v3 = vunpack.c.h.bf16 %v346_v60  ;;  %v461_v9 = vunpack.c.h.bf16 %v344_v2  ;;  %v457_v15 = vunpack.c.h.bf16 %v342_v8 }
  0x1e   : > { %553 = vmatpush.xpose.msra.mxu3 %v407_v22  ;;  %513 = vmatpush.xpose.msra.mxu1 %v405_v23  ;;  %v362_v22 = vunpack.c.l.bf16 %v295_v20  ;;  %v360_v23 = vunpack.c.l.bf16 %v294_v21  ;;  %v363_v24 = vunpack.c.h.bf16 %v295_v20  ;;  %v361_v25 = vunpack.c.h.bf16 %v294_v21  ;;  %v338_v20 = vld [vmem:[%s899_s24 + $0x170] sm:$0xff] }
  0x1f   : > { %v453_v21 = vunpack.c.h.bf16 %v340_v14 }
  0x21   : > { %534 = vmatpush.xpose.msra.mxu2 %v402_v26  ;;  %494 = vmatpush.xpose.msra.mxu0 %v400_v27  ;;  %v293_v26 = vld [vmem:[%s899_s24 + $0x8] sm:$0xff]  ;;  %v292_v27 = vld [vmem:[%s899_s24] sm:$0xff] }
  0x22   : > { %554 = vmatpush.xpose.msra.mxu3 %v403_v28  ;;  %514 = vmatpush.xpose.msra.mxu1 %v401_v29  ;;  %v355_v28 = vld [vmem:[%s899_s24 + $0x1f8] sm:$0xff]  ;;  %v354_v29 = vld [vmem:[%s899_s24 + $0x1f0] sm:$0xff]  ;;  %v358_v30 = vunpack.c.l.bf16 %v293_v26  ;;  %v356_v31 = vunpack.c.l.bf16 %v292_v27  ;;  %v357_v37 = vunpack.c.h.bf16 %v292_v27  ;;  %v449_v27 = vunpack.c.h.bf16 %v338_v20 }
  0x25   : > { %535 = vmatpush.xpose.msra.mxu2 %v398_v32  ;;  %495 = vmatpush.xpose.msra.mxu0 %v396_v33  ;;  %v482_v32 = vunpack.c.l.bf16 %v355_v28  ;;  %v359_v33 = vunpack.c.h.bf16 %v293_v26  ;;  %v336_v26 = vld [vmem:[%s899_s24 + $0x160] sm:$0xff] }
  0x26   : > { %555 = vmatpush.xpose.msra.mxu3 %v399_v34  ;;  %515 = vmatpush.xpose.msra.mxu1 %v397_v35  ;;  %v480_v34 = vunpack.c.l.bf16 %v354_v29  ;;  %v483_v35 = vunpack.c.h.bf16 %v355_v28 }
  0x29   : > { %536 = vmatpush.xpose.msra.mxu2 %v394_v38  ;;  %496 = vmatpush.xpose.msra.mxu0 %v392_v39  ;;  %v352_v38 = vld [vmem:[%s899_s24 + $0x1e0] sm:$0xff]  ;;  %v481_v39 = vunpack.c.h.bf16 %v354_v29  ;;  %v444_v29 = vunpack.c.l.bf16 %v336_v26 }
  0x2a   : > { %556 = vmatpush.xpose.msra.mxu3 %v395_v40  ;;  %516 = vmatpush.xpose.msra.mxu1 %v393_v41  ;;  %v940_v40 = vld [vmem:[%s1020_s0 + $0x10] sm:$0xff]  ;;  %v478_v41 = vunpack.c.l.bf16 %v353_v36  ;;  %v476_v43 = vunpack.c.l.bf16 %v352_v38  ;;  %v477_v48 = vunpack.c.h.bf16 %v352_v38  ;;  %v332_v38 = vld [vmem:[%s899_s24 + $0x140] sm:$0xff] }
  0x2d   : > { %537 = vmatpush.xpose.msra.mxu2 %v390_v44  ;;  %497 = vmatpush.xpose.msra.mxu0 %v388_v45  ;;  %v479_v44 = vunpack.c.h.bf16 %v353_v36  ;;  %v950_v45 = vld [vmem:[%s1020_s0 + $0x18] sm:$0xff] }
  0x2e   : > { %557 = vmatpush.xpose.msra.mxu3 %v391_v46  ;;  %517 = vmatpush.xpose.msra.mxu1 %v389_v47  ;;  %v351_v46 = vld [vmem:[%s899_s24 + $0x1d8] sm:$0xff]  ;;  %v350_v47 = vld [vmem:[%s899_s24 + $0x1d0] sm:$0xff] }
  0x2f   : > { %v473_v55 = vunpack.c.h.bf16 %v350_v47 }
  0x31   : > { %538 = vmatpush.xpose.msra.mxu2 %v386_v50  ;;  %498 = vmatpush.xpose.msra.mxu0 %v384_v51  ;;  %v474_v50 = vunpack.c.l.bf16 %v351_v46  ;;  %v472_v51 = vunpack.c.l.bf16 %v350_v47  ;;  %v330_v47 = vld [vmem:[%s899_s24 + $0x130] sm:$0xff] }
  0x32   : > { %558 = vmatpush.xpose.msra.mxu3 %v387_v52  ;;  %518 = vmatpush.xpose.msra.mxu1 %v385_v53  ;;  %v475_v52 = vunpack.c.h.bf16 %v351_v46  ;;  %v349_v53 = vld [vmem:[%s899_s24 + $0x1c8] sm:$0xff]  ;;  %v331_v46 = vld [vmem:[%s899_s24 + $0x138] sm:$0xff] }
  0x35   : > { %539 = vmatpush.xpose.msra.mxu2 %v382_v56  ;;  %499 = vmatpush.xpose.msra.mxu0 %v380_v57  ;;  %v470_v56 = vunpack.c.l.bf16 %v349_v53  ;;  %v468_v57 = vunpack.c.l.bf16 %v348_v54  ;;  %v328_v54 = vld [vmem:[%s899_s24 + $0x120] sm:$0xff] }
  0x36   : > { %559 = vmatpush.xpose.msra.mxu3 %v383_v58  ;;  %519 = vmatpush.xpose.msra.mxu1 %v381_v59  ;;  %v471_v58 = vunpack.c.h.bf16 %v349_v53  ;;  %v347_v59 = vld [vmem:[%s899_s24 + $0x1b8] sm:$0xff]  ;;  %v329_v53 = vld [vmem:[%s899_s24 + $0x128] sm:$0xff] }
  0x39   : > { %540 = vmatpush.xpose.msra.mxu2 %v378_v62  ;;  %500 = vmatpush.xpose.msra.mxu0 %v376_v63  ;;  %v466_v62 = vunpack.c.l.bf16 %v347_v59  ;;  %v464_v63 = vunpack.c.l.bf16 %v346_v60  ;;  %v326_v60 = vld [vmem:[%s899_s24 + $0x110] sm:$0xff] }
  0x3a   : > { %560 = vmatpush.xpose.msra.mxu3 %v379_v0  ;;  %520 = vmatpush.xpose.msra.mxu1 %v377_v1  ;;  %v467_v0 = vunpack.c.h.bf16 %v347_v59  ;;  %v345_v1 = vld [vmem:[%s899_s24 + $0x1a8] sm:$0xff]  ;;  %v327_v59 = vld [vmem:[%s899_s24 + $0x118] sm:$0xff] }
  0x3d   : > { %541 = vmatpush.xpose.msra.mxu2 %v374_v4  ;;  %501 = vmatpush.xpose.msra.mxu0 %v372_v5  ;;  %v462_v4 = vunpack.c.l.bf16 %v345_v1  ;;  %v460_v5 = vunpack.c.l.bf16 %v344_v2  ;;  %v324_v2 = vld [vmem:[%s899_s24 + $0x100] sm:$0xff] }
  0x3e   : > { %561 = vmatpush.xpose.msra.mxu3 %v375_v6  ;;  %521 = vmatpush.xpose.msra.mxu1 %v373_v7  ;;  %v463_v6 = vunpack.c.h.bf16 %v345_v1  ;;  %v343_v7 = vld [vmem:[%s899_s24 + $0x198] sm:$0xff]  ;;  %v325_v1 = vld [vmem:[%s899_s24 + $0x108] sm:$0xff] }
  0x41   : > { %542 = vmatpush.xpose.msra.mxu2 %v370_v10  ;;  %502 = vmatpush.xpose.msra.mxu0 %v368_v11  ;;  %v458_v10 = vunpack.c.l.bf16 %v343_v7  ;;  %v456_v11 = vunpack.c.l.bf16 %v342_v8  ;;  %v484_v8 = vld [vmem:[%s270_s11] sm:$0x3] }
  0x42   : > { %562 = vmatpush.xpose.msra.mxu3 %v371_v12  ;;  %522 = vmatpush.xpose.msra.mxu1 %v369_v13  ;;  %v459_v12 = vunpack.c.h.bf16 %v343_v7  ;;  %v341_v13 = vld [vmem:[%s899_s24 + $0x188] sm:$0xff]  ;;  %v421_v7 = vunpack.c.h.bf16 %v324_v2 }
  0x45   : > { %543 = vmatpush.xpose.msra.mxu2 %v366_v16  ;;  %503 = vmatpush.xpose.msra.mxu0 %v364_v17  ;;  %v454_v16 = vunpack.c.l.bf16 %v341_v13  ;;  %v452_v17 = vunpack.c.l.bf16 %v340_v14 }
  0x46   : > { %563 = vmatpush.xpose.msra.mxu3 %v367_v18  ;;  %523 = vmatpush.xpose.msra.mxu1 %v365_v19  ;;  %v455_v18 = vunpack.c.h.bf16 %v341_v13  ;;  %v339_v19 = vld [vmem:[%s899_s24 + $0x178] sm:$0xff] }
  0x49   : > { %544 = vmatpush.xpose.msra.mxu2 %v362_v22  ;;  %504 = vmatpush.xpose.msra.mxu0 %v360_v23  ;;  %v450_v22 = vunpack.c.l.bf16 %v339_v19  ;;  %v448_v23 = vunpack.c.l.bf16 %v338_v20 }
  0x4a   : > { %564 = vmatpush.xpose.msra.mxu3 %v363_v24  ;;  %524 = vmatpush.xpose.msra.mxu1 %v361_v25  ;;  %v451_v24 = vunpack.c.h.bf16 %v339_v19  ;;  %v337_v25 = vld [vmem:[%s899_s24 + $0x168] sm:$0xff] }
  0x4b   : > { %v446_v28 = vunpack.c.l.bf16 %v337_v25 }
  0x4d   : > { %545 = vmatpush.xpose.msra.mxu2 %v358_v30  ;;  %505 = vmatpush.xpose.msra.mxu0 %v356_v31  ;;  %v447_v30 = vunpack.c.h.bf16 %v337_v25  ;;  %v335_v31 = vld [vmem:[%s899_s24 + $0x158] sm:$0xff] }
  0x4e   : > { %565 = vmatpush.xpose.msra.mxu3 %v359_v33  ;;  %525 = vmatpush.xpose.msra.mxu1 %v357_v37  ;;  %v445_v33 = vunpack.c.h.bf16 %v336_v26  ;;  %v443_v36 = vunpack.c.h.bf16 %v335_v31  ;;  %v333_v37 = vld [vmem:[%s899_s24 + $0x148] sm:$0xff] }
  0x50   : > { %546 = vmatmul.f32.vlgmr.msra.gmra.mxu2 %v940_v40  ;;  %506 = vmatmul.f32.vlgmr.msra.gmra.mxu0 %v945_v42 }
  0x51   : > { %610 = vmatpush.xpose.msrb.mxu2 %v482_v32  ;;  %570 = vmatpush.xpose.msrb.mxu0 %v480_v34  ;;  %v334_v32 = vld [vmem:[%s899_s24 + $0x150] sm:$0xff]  ;;  %v442_v34 = vunpack.c.l.bf16 %v335_v31 }
  0x52   : > { %630 = vmatpush.xpose.msrb.mxu3 %v483_v35  ;;  %590 = vmatpush.xpose.msrb.mxu1 %v481_v39  ;;  %v440_v35 = vunpack.c.l.bf16 %v334_v32  ;;  %v441_v39 = vunpack.c.h.bf16 %v334_v32 }
  0x53   : > { %566 = vmatmul.f32.vlgmr.msra.gmra.mxu3 %v950_v45  ;;  %526 = vmatmul.f32.vlgmr.msra.gmra.mxu1 %v959_v49 }
  0x55   : > { %611 = vmatpush.xpose.msrb.mxu2 %v478_v41  ;;  %571 = vmatpush.xpose.msrb.mxu0 %v476_v43  ;;  %v438_v41 = vunpack.c.l.bf16 %v333_v37  ;;  %v436_v43 = vunpack.c.l.bf16 %v332_v38 }
  0x56   : > { %631 = vmatpush.xpose.msrb.mxu3 %v479_v44  ;;  %591 = vmatpush.xpose.msrb.mxu1 %v477_v48  ;;  %v439_v44 = vunpack.c.h.bf16 %v333_v37  ;;  %v437_v48 = vunpack.c.h.bf16 %v332_v38 }
  0x59   : > { %612 = vmatpush.xpose.msrb.mxu2 %v474_v50  ;;  %572 = vmatpush.xpose.msrb.mxu0 %v472_v51  ;;  %v434_v50 = vunpack.c.l.bf16 %v331_v46  ;;  %v432_v51 = vunpack.c.l.bf16 %v330_v47 }
  0x5a   : > { %632 = vmatpush.xpose.msrb.mxu3 %v475_v52  ;;  %592 = vmatpush.xpose.msrb.mxu1 %v473_v55  ;;  %v435_v52 = vunpack.c.h.bf16 %v331_v46  ;;  %v433_v55 = vunpack.c.h.bf16 %v330_v47  ;;  %v713_v46 = vld [vmem:[%s275_s14] sm:$0x3]  ;;  %v487_v47 = vperm.slane %v484_v8, 1 }
  0x5d   : > { %613 = vmatpush.xpose.msrb.mxu2 %v470_v56  ;;  %573 = vmatpush.xpose.msrb.mxu0 %v468_v57  ;;  %v430_v56 = vunpack.c.l.bf16 %v329_v53  ;;  %v428_v57 = vunpack.c.l.bf16 %v328_v54 }
  0x5e   : > { %633 = vmatpush.xpose.msrb.mxu3 %v471_v58  ;;  %593 = vmatpush.xpose.msrb.mxu1 %v469_v61  ;;  %v431_v58 = vunpack.c.h.bf16 %v329_v53  ;;  %v429_v61 = vunpack.c.h.bf16 %v328_v54 }
  0x61   : > { %614 = vmatpush.xpose.msrb.mxu2 %v466_v62  ;;  %574 = vmatpush.xpose.msrb.mxu0 %v464_v63  ;;  %v426_v62 = vunpack.c.l.bf16 %v327_v59  ;;  %v424_v63 = vunpack.c.l.bf16 %v326_v60 }
  0x62   : > { %634 = vmatpush.xpose.msrb.mxu3 %v467_v0  ;;  %594 = vmatpush.xpose.msrb.mxu1 %v465_v3  ;;  %v427_v0 = vunpack.c.h.bf16 %v327_v59  ;;  %v425_v3 = vunpack.c.h.bf16 %v326_v60 }
  0x65   : > { %615 = vmatpush.xpose.msrb.mxu2 %v462_v4  ;;  %575 = vmatpush.xpose.msrb.mxu0 %v460_v5  ;;  %v422_v4 = vunpack.c.l.bf16 %v325_v1  ;;  %v420_v5 = vunpack.c.l.bf16 %v324_v2 }
  0x66   : > { %635 = vmatpush.xpose.msrb.mxu3 %v463_v6  ;;  %595 = vmatpush.xpose.msrb.mxu1 %v461_v9  ;;  %v423_v6 = vunpack.c.h.bf16 %v325_v1  ;;  %v855_v9 = vmov 8.0  }
  0x67   : > { %841 = vrcp.f32 %v855_v9 }
  0x69   : > { %616 = vmatpush.xpose.msrb.mxu2 %v458_v10  ;;  %576 = vmatpush.xpose.msrb.mxu0 %v456_v11 }
  0x6a   : > { %636 = vmatpush.xpose.msrb.mxu3 %v459_v12  ;;  %596 = vmatpush.xpose.msrb.mxu1 %v457_v15 }
  0x6d   : > { %617 = vmatpush.xpose.msrb.mxu2 %v454_v16  ;;  %577 = vmatpush.xpose.msrb.mxu0 %v452_v17  ;;  %v842_v10 = vpop.eup %841 }
  0x6e   : > { %637 = vmatpush.xpose.msrb.mxu3 %v455_v18  ;;  %597 = vmatpush.xpose.msrb.mxu1 %v453_v21  ;;  %v663_v12 = vmul.f32 8.0, %v842_v10  ;;  %vm667_vm0 = vweird.f32 %v842_v10 }
  0x70   : > { %v664_v16 = vsub.f32 1.0, %v663_v12 }
  0x71   : > { %618 = vmatpush.xpose.msrb.mxu2 %v450_v22  ;;  %578 = vmatpush.xpose.msrb.mxu0 %v448_v23 }
  0x72   : > { %638 = vmatpush.xpose.msrb.mxu3 %v451_v24  ;;  %598 = vmatpush.xpose.msrb.mxu1 %v449_v27  ;;  %v665_v19 = vmul.f32 %v842_v10, %v664_v16 }
  0x74   : > { %v666_v22 = vadd.f32 %v842_v10, %v665_v19 }
  0x75   : > { %619 = vmatpush.xpose.msrb.mxu2 %v446_v28  ;;  %579 = vmatpush.xpose.msrb.mxu0 %v444_v29 }
  0x76   : > { %639 = vmatpush.xpose.msrb.mxu3 %v447_v30  ;;  %599 = vmatpush.xpose.msrb.mxu1 %v445_v33  ;;  %v668_v25 = vsel %vm667_vm0, %v842_v10, %v666_v22 }
  0x79   : > { %620 = vmatpush.xpose.msrb.mxu2 %v442_v34  ;;  %580 = vmatpush.xpose.msrb.mxu0 %v440_v35 }
  0x7a   : > { %640 = vmatpush.xpose.msrb.mxu3 %v443_v36  ;;  %600 = vmatpush.xpose.msrb.mxu1 %v441_v39 }
  0x7d   : > { %621 = vmatpush.xpose.msrb.mxu2 %v438_v41  ;;  %581 = vmatpush.xpose.msrb.mxu0 %v436_v43 }
  0x7e   : > { %641 = vmatpush.xpose.msrb.mxu3 %v439_v44  ;;  %601 = vmatpush.xpose.msrb.mxu1 %v437_v48 }
  0x81   : > { %622 = vmatpush.xpose.msrb.mxu2 %v434_v50  ;;  %582 = vmatpush.xpose.msrb.mxu0 %v432_v51  ;;  %v721_v50 = vld [vmem:[%s280_s17] sm:$0x3]  ;;  %v715_v51 = vperm.slane %v713_v46, 0 }
  0x82   : > { %642 = vmatpush.xpose.msrb.mxu3 %v435_v52  ;;  %602 = vmatpush.xpose.msrb.mxu1 %v433_v55  ;;  %v723_v55 = vperm.slane %v721_v50, 0 }
  0x85   : > { %623 = vmatpush.xpose.msrb.mxu2 %v430_v56  ;;  %583 = vmatpush.xpose.msrb.mxu0 %v428_v57 }
  0x86   : > { %643 = vmatpush.xpose.msrb.mxu3 %v431_v58  ;;  %603 = vmatpush.xpose.msrb.mxu1 %v429_v61 }
  0x89   : > { %624 = vmatpush.xpose.msrb.mxu2 %v426_v62  ;;  %584 = vmatpush.xpose.msrb.mxu0 %v424_v63 }
  0x8a   : > { %644 = vmatpush.xpose.msrb.mxu3 %v427_v0  ;;  %604 = vmatpush.xpose.msrb.mxu1 %v425_v3 }
  0x8d   : > { %625 = vmatpush.xpose.msrb.mxu2 %v422_v4  ;;  %585 = vmatpush.xpose.msrb.mxu0 %v420_v5 }
  0x8e   : > { %645 = vmatpush.xpose.msrb.mxu3 %v423_v6  ;;  %605 = vmatpush.xpose.msrb.mxu1 %v421_v7 }
  0x90   : > { %626 = vmatmul.f32.vlgmr.msrb.gmra.mxu2 %v940_v40  ;;  %586 = vmatmul.f32.vlgmr.msrb.gmra.mxu0 %v945_v42  ;;  %v486_v40 = vperm.slane %v484_v8, 0 }
  0x91   : > { %646 = vmatmul.f32.vlgmr.msrb.gmra.mxu3 %v950_v45  ;;  %606 = vmatmul.f32.vlgmr.msrb.gmra.mxu1 %v959_v49 }
  0xcd   : > { %v507_v42 = vpop.f32.mrf.mxu0 }
  0xce   : > { %v508_v11 = vadd.f32 %v507_v42, %v486_v40 }
  0xd0   : > { %v527_v45 = vpop.f32.mrf.mxu1 }
  0xd1   : > { %v528_v49 = vadd.f32 %v527_v45, %v508_v11 }
  0xd3   : > { %v547_v13 = vpop.f32.mrf.mxu2 }
  0xd4   : > { %v548_v14 = vadd.f32 %v547_v13, %v528_v49 }
  0xd6   : > { %v567_v15 = vpop.f32.mrf.mxu3 }
  0xd7   : > { %v568_v17 = vadd.f32 %v567_v15, %v548_v14 }
  0xd9   : > { %v650_v18 = vrot.slane %v568_v17, 4 }
  0xdb   : > { %v651_v20 = vadd.f32 %v650_v18, %v568_v17 }
  0xdd   : > { %v652_v21 = vrot.slane %v651_v20, 2 }
  0xdf   : > { %v653_v23 = vadd.f32 %v652_v21, %v651_v20  ;;  %v716_v21 = vperm.slane %v713_v46, 1 }
  0xe1   : > { %v654_v24 = vrot.slane %v653_v23, 1 }
  0xe3   : > { %v655_v26 = vadd.f32 %v654_v24, %v653_v23  ;;  %v724_v24 = vperm.slane %v721_v50, 1 }
  0xe5   : > { %v669_v27 = vmul.f32 %v668_v25, %v655_v26 }
  0xe7   : > { %v671_v28 = vsub.f32 %v568_v17, %v669_v27 }
  0xe9   : > { %v673_v29 = vmul.f32 %v671_v28, %v671_v28 }
  0xeb   : > { %v675_v30 = vrot.slane %v673_v29, 4 }
  0xed   : > { %v676_v31 = vadd.f32 %v675_v30, %v673_v29 }
  0xef   : > { %v677_v32 = vrot.slane %v676_v31, 2 }
  0xf1   : > { %v678_v33 = vadd.f32 %v677_v32, %v676_v31 }
  0xf3   : > { %v679_v34 = vrot.slane %v678_v33, 1 }
  0xf5   : > { %v680_v35 = vadd.f32 %v679_v34, %v678_v33 }
  0xf7   : > { %v687_v36 = vmul.f32 %v680_v35, %v668_v25 }
  0xf9   : > { %v689_v37 = vadd.f32 0.0001, %v687_v36 }
  0xfb   : > { %843 = vrsqrt.f32 %v689_v37  ;;  %vm697_vm1 = vweird.f32 %v689_v37 }
 0x101   : > { %v844_v38 = vpop.eup %843 }
 0x102   : > { %v692_v39 = vmul.f32 %v844_v38, %v689_v37  ;;  %vm698_vm2 = vweird.f32 %v844_v38 }
 0x103   : > { %vm699_vm3 = vmor %vm697_vm1, %vm698_vm2 }
 0x104   : > { %v693_v41 = vmul.f32 %v844_v38, %v692_v39 }
 0x106   : > { %v694_v43 = vmul.f32 0.5, %v693_v41 }
 0x108   : > { %v695_v44 = vsub.f32 1.5, %v694_v43 }
 0x10a   : > { %v696_v48 = vmul.f32 %v844_v38, %v695_v44 }
 0x10c   : > { %v700_v52 = vsel %vm699_vm3, %v844_v38, %v696_v48 }
 0x10d   : > { %v587_v53 = vpop.f32.mrf.mxu0  ;;  %v711_v54 = vmul.f32 %v700_v52, %v671_v28 }
 0x10e   : > { %v588_v56 = vadd.f32 %v587_v53, %v487_v47  ;;  %v607_v57 = vpop.f32.mrf.mxu1 }
 0x10f   : > { %v719_v58 = vmul.f32 %v715_v51, %v711_v54 }
 0x110   : > { %v608_v59 = vadd.f32 %v607_v57, %v588_v56 }
 0x111   : > { %v727_v60 = vadd.f32 %v723_v55, %v719_v58 }
 0x113   : > { %v627_v61 = vpop.f32.mrf.mxu2  ;;  %v729_v0 = vmax.f32 %v727_v60, 0.0 }
 0x114   : > { %v628_v62 = vadd.f32 %v627_v61, %v608_v59  ;;  %v647_v63 = vpop.f32.mrf.mxu3 }
 0x115   : > { %731 = vst [vmem:[%s1013_s22] sm:$0xff] %v729_v0 }
 0x116   : > { %v648_v1 = vadd.f32 %v647_v63, %v628_v62 }
 0x118   : > { %v656_v2 = vrot.slane %v648_v1, 4 }
 0x11a   : > { %v657_v3 = vadd.f32 %v656_v2, %v648_v1 }
 0x11c   : > { %v658_v4 = vrot.slane %v657_v3, 2 }
 0x11e   : > { %v659_v5 = vadd.f32 %v658_v4, %v657_v3 }
 0x120   : > { %v660_v6 = vrot.slane %v659_v5, 1 }
 0x122   : > { %v661_v7 = vadd.f32 %v660_v6, %v659_v5 }
 0x124   : > { %v670_v8 = vmul.f32 %v668_v25, %v661_v7 }
 0x126   : > { %v672_v9 = vsub.f32 %v648_v1, %v670_v8 }
 0x128   : > { %v674_v40 = vmul.f32 %v672_v9, %v672_v9 }
 0x12a   : > { %v681_v10 = vrot.slane %v674_v40, 4 }
 0x12c   : > { %v682_v42 = vadd.f32 %v681_v10, %v674_v40 }
 0x12e   : > { %v683_v11 = vrot.slane %v682_v42, 2 }
 0x130   : > { %v684_v45 = vadd.f32 %v683_v11, %v682_v42 }
 0x132   : > { %v685_v12 = vrot.slane %v684_v45, 1 }
 0x134   : > { %v686_v49 = vadd.f32 %v685_v12, %v684_v45 }
 0x136   : > { %v688_v13 = vmul.f32 %v686_v49, %v668_v25 }
 0x138   : > { %v690_v14 = vadd.f32 0.0001, %v688_v13 }
 0x13a   : > { %845 = vrsqrt.f32 %v690_v14  ;;  %vm707_vm5 = vweird.f32 %v690_v14 }
 0x140   : > { %v846_v15 = vpop.eup %845 }
 0x141   : > { %v702_v16 = vmul.f32 %v846_v15, %v690_v14  ;;  %vm708_vm4 = vweird.f32 %v846_v15 }
 0x142   : > { %vm709_vm6 = vmor %vm707_vm5, %vm708_vm4 }
 0x143   : > { %v703_v17 = vmul.f32 %v846_v15, %v702_v16 }
 0x145   : > { %v704_v18 = vmul.f32 0.5, %v703_v17 }
 0x147   : > { %v705_v19 = vsub.f32 1.5, %v704_v18 }
 0x149   : > { %v706_v20 = vmul.f32 %v846_v15, %v705_v19 }
 0x14b   : > { %v710_v22 = vsel %vm709_vm6, %v846_v15, %v706_v20 }
 0x14c   : > { %v712_v23 = vmul.f32 %v710_v22, %v672_v9 }
 0x14e   : > { %v720_v26 = vmul.f32 %v716_v21, %v712_v23 }
 0x150   : > { %v728_v27 = vadd.f32 %v724_v24, %v720_v26 }
 0x152   : > { %v730_v28 = vmax.f32 %v728_v27, 0.0 }
 0x154   : > { %732 = vst [vmem:[%s1013_s22 + $0x8] sm:$0xff] %v730_v28 }
 0x155 PF: > { %s15_s18 = sadd.s32 1, %s853_s18  }
 0x156   : > { %p12_p5 = scmp.ge.s32.totalorder %s15_s18, 4  }
 0x158   :  { %14 = sbr.rel (!%p12_p5) target bundleno = 1 (0x1), region = 79 }

// kernel: binaryconnect_forward.7
= control target key start
LH: loop header
LB: loop body
LE: loop exit
PB: predicated region body
PF: predicated region fallthrough
CT: control target
= control target key end

     0   :  { %s310_s0 = inlined_call_operand.vmem [shape: f32[8,512], index: 0, kind: input, shape index: {}]   ;;  %s311_s1 = inlined_call_operand.vmem [shape: bf16[16,512], index: 1, kind: input, shape index: {}]   ;;  %s312_s2 = inlined_call_operand.vmem [shape: f32[1,16], index: 2, kind: input, shape index: {}]   ;;  %s313_s3 = inlined_call_operand.vmem [shape: f32[1,16], index: 3, kind: input, shape index: {}]   ;;  %s314_s4 = inlined_call_operand.vmem [shape: f32[1,16], index: 4, kind: input, shape index: {}]   ;;  %s315_s5 = inlined_call_operand.hbm [shape: f32[8,16], index: 5, kind: output, shape index: {}]  }
   0x1   :  { %v28_v0 = vld [vmem:[%s311_s1 + $0x18] sm:$0xff]  ;;  %v27_v1 = vld [vmem:[%s311_s1 + $0x10] sm:$0xff]  ;;  %v26_v2 = vld [vmem:[%s311_s1 + $0x8] sm:$0xff] }
   0x2   :  { %v35_v3 = vunpack.c.l.bf16 %v28_v0  ;;  %v33_v4 = vunpack.c.l.bf16 %v27_v1  ;;  %v36_v5 = vunpack.c.h.bf16 %v28_v0  ;;  %v34_v6 = vunpack.c.h.bf16 %v27_v1  ;;  %v25_v7 = vld [vmem:[%s311_s1] sm:$0xff] }
   0x3   :  { %v31_v8 = vunpack.c.l.bf16 %v26_v2  ;;  %v29_v9 = vunpack.c.l.bf16 %v25_v7  ;;  %v32_v10 = vunpack.c.h.bf16 %v26_v2  ;;  %v30_v11 = vunpack.c.h.bf16 %v25_v7 }
   0x4   :  { %95 = vmatpush.xpose.msra.mxu2 %v35_v3  ;;  %55 = vmatpush.xpose.msra.mxu0 %v33_v4 }
   0x5   :  { %115 = vmatpush.xpose.msra.mxu3 %v36_v5  ;;  %75 = vmatpush.xpose.msra.mxu1 %v34_v6 }
   0x6   :  { %10 = vsyncpa [#allocation3], 0  ;;  %v23_v12 = vld [vmem:[%s310_s0 + $0x10] sm:$0xff]  ;;  %v21_v13 = vld [vmem:[%s310_s0] sm:$0xff]  ;;  %v237_v16 = vmov 8.0   ;;  %vm121_vm0 = vcmask 130048  }
   0x7   :  { %v24_v14 = vld [vmem:[%s310_s0 + $0x18] sm:$0xff]  ;;  %v22_v15 = vld [vmem:[%s310_s0 + $0x8] sm:$0xff]  ;;  %203 = vrcp.f32 %v237_v16  ;;  %v200_v17 = vld [vmem:[%s312_s2] ss:$0 sm:$0xff]  ;;  %s189_s14 = sshll.u32 %s315_s5, 4  ;;  %s190_s14 = int_to_ptr.hbm [resolvable:$true] %s189_s14 }
   0x8   :  { %96 = vmatpush.xpose.msra.mxu2 %v31_v8  ;;  %56 = vmatpush.xpose.msra.mxu0 %v29_v9  ;;  %v201_v57 = vld [vmem:[%s313_s3] ss:$0 sm:$0xff]  ;;  %s238_s3 = smov [#allocation2]  }
   0x9   :  { %116 = vmatpush.xpose.msra.mxu3 %v32_v10  ;;  %76 = vmatpush.xpose.msra.mxu1 %v30_v11  ;;  %v202_v60 = vld [vmem:[%s314_s4] ss:$0 sm:$0xff]  ;;  %s187_s12 = sshll.u32 %s238_s3, 4  ;;  %s188_s12 = int_to_ptr.vmem [resolvable:$true] %s187_s12 }
   0xb   :  { %97 = vmatmul.f32.vlgmr.msra.gmra.mxu2 %v23_v12  ;;  %57 = vmatmul.f32.vlgmr.msra.gmra.mxu0 %v21_v13 }
   0xc   :  { %117 = vmatmul.f32.vlgmr.msra.gmra.mxu3 %v24_v14  ;;  %77 = vmatmul.f32.vlgmr.msra.gmra.mxu1 %v22_v15 }
   0xd   :  { %v204_v21 = vpop.eup %203 }
   0xe   :  { %v130_v23 = vmul.f32 8.0, %v204_v21  ;;  %vm134_vm1 = vweird.f32 %v204_v21 }
  0x10   :  { %v131_v28 = vsub.f32 1.0, %v130_v23 }
  0x12   :  { %v132_v31 = vmul.f32 %v204_v21, %v131_v28 }
  0x14   :  { %v133_v34 = vadd.f32 %v204_v21, %v132_v31 }
  0x16   :  { %v135_v37 = vsel %vm134_vm1, %v204_v21, %v133_v34 }
  0x88   :  { %v58_v18 = vpop.f32.mrf.mxu0 }
  0x89   :  { %v59_v19 = vadd.f32 %v200_v17, %v58_v18  ;;  %v78_v20 = vpop.f32.mrf.mxu1 }
  0x8b   :  { %v79_v22 = vadd.f32 %v78_v20, %v59_v19 }
  0x8e   :  { %v98_v24 = vpop.f32.mrf.mxu2 }
  0x8f   :  { %v99_v25 = vadd.f32 %v98_v24, %v79_v22  ;;  %v118_v26 = vpop.f32.mrf.mxu3 }
  0x91   :  { %v119_v27 = vadd.f32 %v118_v26, %v99_v25 }
  0x93   :  { %v122_v29 = vsel %vm121_vm0, %v119_v27, 0.0 }
  0x94   :  { %v123_v30 = vrot.slane %v122_v29, 4 }
  0x96   :  { %v124_v32 = vadd.f32 %v123_v30, %v122_v29 }
  0x98   :  { %v125_v33 = vrot.slane %v124_v32, 2 }
  0x9a   :  { %v126_v35 = vadd.f32 %v125_v33, %v124_v32 }
  0x9c   :  { %v127_v36 = vrot.slane %v126_v35, 1 }
  0x9e   :  { %v128_v38 = vadd.f32 %v127_v36, %v126_v35 }
  0xa0   :  { %v136_v39 = vmul.f32 %v135_v37, %v128_v38 }
  0xa2   :  { %v137_v40 = vsub.f32 %v119_v27, %v136_v39 }
  0xa4   :  { %v138_v41 = vmul.f32 %v137_v40, %v137_v40 }
  0xa6   :  { %v139_v42 = vsel %vm121_vm0, %v138_v41, 0.0 }
  0xa7   :  { %v140_v43 = vrot.slane %v139_v42, 4 }
  0xa9   :  { %v141_v44 = vadd.f32 %v140_v43, %v139_v42 }
  0xab   :  { %v142_v45 = vrot.slane %v141_v44, 2 }
  0xad   :  { %v143_v46 = vadd.f32 %v142_v45, %v141_v44 }
  0xaf   :  { %v144_v47 = vrot.slane %v143_v46, 1 }
  0xb1   :  { %v145_v48 = vadd.f32 %v144_v47, %v143_v46 }
  0xb3   :  { %v146_v49 = vmul.f32 %v145_v48, %v135_v37 }
  0xb5   :  { %v147_v50 = vadd.f32 0.0001, %v146_v49 }
  0xb7   :  { %205 = vrsqrt.f32 %v147_v50  ;;  %vm154_vm3 = vweird.f32 %v147_v50 }
  0xbd   :  { %v206_v51 = vpop.eup %205 }
  0xbe   :  { %v149_v52 = vmul.f32 %v206_v51, %v147_v50  ;;  %vm155_vm2 = vweird.f32 %v206_v51 }
  0xbf   :  { %vm156_vm4 = vmor %vm154_vm3, %vm155_vm2 }
  0xc0   :  { %v150_v53 = vmul.f32 %v206_v51, %v149_v52 }
  0xc2   :  { %v151_v54 = vmul.f32 0.5, %v150_v53 }
  0xc4   :  { %v152_v55 = vsub.f32 1.5, %v151_v54 }
  0xc6   :  { %v153_v56 = vmul.f32 %v206_v51, %v152_v55 }
  0xc8   :  { %v157_v58 = vsel %vm156_vm4, %v206_v51, %v153_v56 }
  0xc9   :  { %v158_v59 = vmul.f32 %v157_v58, %v137_v40 }
  0xcb   :  { %v163_v61 = vmul.f32 %v201_v57, %v158_v59 }
  0xcd   :  { %v168_v62 = vadd.f32 %v202_v60, %v163_v61 }
  0xcf   :  { %v169_v63 = vsel %vm121_vm0, %v168_v62, -inf }
  0xd0   :  { %170 = vmax.xlane.f32.xlu0 %v169_v63 }
 0x143   :  { %v171_v0 = vpop.xlane.xlu0 %170 }
 0x144   :  { %v172_v1 = vsub.f32 %v168_v62, %v171_v0 }
 0x146   :  { %v173_v2 = vmul.f32 1.442695, %v172_v1 }
 0x148   :  { %207 = vpow2.f32 %v173_v2 }
 0x14e   :  { %v208_v3 = vpop.eup %207 }
 0x14f   :  { %v175_v4 = vsel %vm121_vm0, %v208_v3, 0.0 }
 0x150   :  { %176 = vadd.xlane.f32.xlu0 %v175_v4 }
 0x1c3   :  { %v177_v5 = vpop.xlane.xlu0 %176 }
 0x1c4   :  { %209 = vlog2.f32 %v177_v5 }
 0x1ca   :  { %v210_v6 = vpop.eup %209 }
 0x1cb   :  { %v179_v7 = vmul.f32 0.6931472, %v210_v6 }
 0x1cd   :  { %v180_v8 = vsub.f32 %v172_v1, %v179_v7 }
 0x1cf   :  { %181 = vst.msk [vmem:[#allocation2] sm:$0xff] %vm121_vm0, %v180_v8 }
 0x1d0   :  { %192 = dma.vmem_to_hbm [thread:$0]  %s188_s12, 128, %s190_s14, [#allocation3]  }
 0x1d1   :  { %235 = dma.done.wait [#allocation3], 128  }
 0x1d2   :  { %236 = vsyncadd [#allocation3], 4294967168 }
 0x1d3   :  { %197 = vsyncpa [#allocation3], 1 }

</bundles_post_ra>
